<compile_context>
chip_gen: v5e
topology: v5e:2x2
jax: 0.10.0
libtpu: 0.0.40
codegen_flags: <defaults>
</compile_context>

<pallas_src>
import functools
import math

import jax
import jax.numpy as jnp
from jax.experimental import pallas as pl
from jax.experimental.pallas import tpu as pltpu

# ---- synthetic-model dimensions (small, consistent with a ViT forward) ----
B = 2                      # batch
C = 3                      # RGB channels
IMG = 16                   # image size (input assumed already resized)
PATCH = 4                  # patch size
GRID = IMG // PATCH        # 4 patches per side
N = GRID * GRID            # 16 patches
PD = C * PATCH * PATCH     # 48 flattened patch dim
D = 32                     # embed dim
HEADS = 2
HD = D // HEADS            # 16 head dim
MLP = 4 * D                # 128 MLP hidden
T = N + 1                  # tokens incl. CLS (prefix) token
TP = 24                    # per-image token rows, padded to a sublane multiple
EPS = 1e-6
SCALE = 1.0 / math.sqrt(HD)
NEG = -1e30                # additive attention mask value

# Rows of the packed (VEC_ROWS, MLP) bias/scale table (single DMA).
_R_QKVB = 0                 # 6 rows: (q, k, v) x (head0, head1), each len HD
_R_PROJB = 6
_R_FC1B = 7                 # full MLP width (ln2 beta folded in)
_R_FC2B = 8
_R_NG, _R_NB = 9, 10
VEC_ROWS = 16

# TODO(synk): T.Resize (bilinear image resize) has no clean Pallas hot-path
# equivalent at these shapes; inputs are assumed to already be img_size.


def _normalize(x):
    """Layernorm statistics only; gamma/beta are folded into the next matmul."""
    mu = jnp.mean(x, axis=-1, keepdims=True)
    var = jnp.mean(jnp.square(x - mu), axis=-1, keepdims=True)
    return (x - mu) * jax.lax.rsqrt(var + EPS)


def vit_kernel(patches_ref, pwf_ref, pos_ref, qkvh_ref, projw_ref, fc1w_ref,
               fc2w_ref, vecs_ref, out_ref, *, bb):
    """One grid step processes `bb` images as a (bb*TP, D) token slab.

    Token order inside each TP-row block: rows 0..N-1 = patch tokens,
    row N = CLS/prefix token, rows T..TP-1 = zero padding (masked keys,
    never read back).  out_ref itself is the residual-stream slab.
    """
    R = bb * TP

    # --- patch embedding + CLS + pos (Normalize / patch bias / cls folded
    # host-side; patch & pos pad rows are zero, so pad rows stay finite) ---
    out_ref[...] = (
        jnp.dot(patches_ref[...], pwf_ref[...],
                preferred_element_type=jnp.float32)
        + pos_ref[...])

    # --- static block-diagonal + key-padding attention mask ---
    ri = jax.lax.broadcasted_iota(jnp.int32, (R, R), 0)
    ci = jax.lax.broadcasted_iota(jnp.int32, (R, R), 1)
    valid = None
    for b in range(bb):                                      # static unroll
        r0 = b * TP
        vb = (ri >= r0) & (ri < r0 + TP) & (ci >= r0) & (ci < r0 + T)
        valid = vb if valid is None else (valid | vb)
    mask_add = jnp.where(valid, 0.0, NEG)

    # --- multi-head self-attention (ln1 gamma/beta and 1/sqrt(hd) folded) ---
    x_hat = _normalize(out_ref[...])
    attn = None
    for h in range(HEADS):                                   # static unroll
        q = (jnp.dot(x_hat, qkvh_ref[h], preferred_element_type=jnp.float32)
             + vecs_ref[_R_QKVB + h:_R_QKVB + h + 1, 0:HD])
        k = (jnp.dot(x_hat, qkvh_ref[HEADS + h],
                     preferred_element_type=jnp.float32)
             + vecs_ref[_R_QKVB + HEADS + h:_R_QKVB + HEADS + h + 1, 0:HD])
        v = (jnp.dot(x_hat, qkvh_ref[2 * HEADS + h],
                     preferred_element_type=jnp.float32)
             + vecs_ref[_R_QKVB + 2 * HEADS + h:
                        _R_QKVB + 2 * HEADS + h + 1, 0:HD])
        s = jnp.dot(q, k.T, preferred_element_type=jnp.float32) + mask_add
        s = s - jnp.max(s, axis=-1, keepdims=True)
        p = jnp.exp(s)
        p = p * pl.reciprocal(jnp.sum(p, axis=-1, keepdims=True), approx=True)
        o = jnp.dot(p, v, preferred_element_type=jnp.float32)
        # concat(o_h0, o_h1) @ projw == sum_h o_h @ projw[h*HD:(h+1)*HD]
        c = jnp.dot(o, projw_ref[h * HD:(h + 1) * HD, :],
                    preferred_element_type=jnp.float32)
        attn = c if attn is None else attn + c
    out_ref[...] = (out_ref[...] + attn
                    + vecs_ref[_R_PROJB:_R_PROJB + 1, 0:D])

    # --- MLP (ln2 gamma/beta folded into fc1 weight/bias) ---
    h2 = _normalize(out_ref[...])
    hidden = (jnp.dot(h2, fc1w_ref[...], preferred_element_type=jnp.float32)
              + vecs_ref[_R_FC1B:_R_FC1B + 1, :])
    # TODO(synk): timm ViT uses exact (erf) GELU; tanh-approx is kept so the
    # op stays on guaranteed-lowered EUP primitives (exp/tanh).
    hidden = jax.nn.gelu(hidden, approximate=True)
    mlp = (jnp.dot(hidden, fc2w_ref[...], preferred_element_type=jnp.float32)
           + vecs_ref[_R_FC2B:_R_FC2B + 1, 0:D])
    out_ref[...] = out_ref[...] + mlp

    # --- final model norm (get_intermediate_layers(..., norm=True)) ---
    out_ref[...] = (_normalize(out_ref[...])
                    * vecs_ref[_R_NG:_R_NG + 1, 0:D]
                    + vecs_ref[_R_NB:_R_NB + 1, 0:D])


def init_params(key):
    """Raw ViT-style parameters (mirrors the PyTorch module's structure)."""
    ks = jax.random.split(key, 16)
    w, s = 0.02, 0.01
    return dict(
        mean=jnp.array([0.485, 0.456, 0.406], jnp.float32),
        std=jnp.array([0.229, 0.224, 0.225], jnp.float32),
        pw=jax.random.normal(ks[0], (PD, D), jnp.float32) * w,
        pb=jax.random.normal(ks[1], (D,), jnp.float32) * s,
        cls=jax.random.normal(ks[2], (1, D), jnp.float32) * w,
        pos=jax.random.normal(ks[3], (T, D), jnp.float32) * w,
        ln1g=1.0 + jax.random.normal(ks[4], (D,), jnp.float32) * s,
        ln1b=jax.random.normal(ks[5], (D,), jnp.float32) * s,
        qkvw=jax.random.normal(ks[6], (D, 3 * D), jnp.float32) * w,
        qkvb=jax.random.normal(ks[7], (3 * D,), jnp.float32) * s,
        projw=jax.random.normal(ks[8], (D, D), jnp.float32) * w,
        projb=jax.random.normal(ks[9], (D,), jnp.float32) * s,
        ln2g=1.0 + jax.random.normal(ks[10], (D,), jnp.float32) * s,
        ln2b=jax.random.normal(ks[11], (D,), jnp.float32) * s,
        fc1w=jax.random.normal(ks[12], (D, MLP), jnp.float32) * w,
        fc1b=jax.random.normal(ks[13], (MLP,), jnp.float32) * s,
        fc2w=jax.random.normal(ks[14], (MLP, D), jnp.float32) * w,
        fc2b=jax.random.normal(ks[15], (D,), jnp.float32) * s,
        ng=jnp.ones((D,), jnp.float32),
        nb=jnp.zeros((D,), jnp.float32),
    )


def pack_params(p):
    """Host-side folds: Normalize/pb/cls, LN gammas/betas, attention scale."""
    mean_p = jnp.repeat(p["mean"], PATCH * PATCH)          # (PD,) channel-major
    inv_std_p = 1.0 / jnp.repeat(p["std"], PATCH * PATCH)
    pwf = p["pw"] * inv_std_p[:, None]                     # fold the divide
    pbf = p["pb"] - (mean_p * inv_std_p) @ p["pw"]         # fold the subtract

    # per-image positional slab: patch rows (with pbf), CLS row, zero padding
    pos_img = jnp.zeros((TP, D), jnp.float32)
    pos_img = pos_img.at[:N, :].set(p["pos"][1:] + pbf[None, :])
    pos_img = pos_img.at[N, :].set(p["pos"][0] + p["cls"][0])

    # fold ln1 gamma/beta into qkv weight/bias, and SCALE into the q block
    qkvw_f = p["ln1g"][:, None] * p["qkvw"]
    qkvb_f = p["ln1b"] @ p["qkvw"] + p["qkvb"]
    qkvw_f = qkvw_f.at[:, :D].multiply(SCALE)
    qkvb_f = qkvb_f.at[:D].multiply(SCALE)
    # per-head q/k/v weights stacked on a leading axis: index = kind*HEADS + h
    qkvh = qkvw_f.reshape(D, 3, HEADS, HD).transpose(1, 2, 0, 3)
    qkvh = qkvh.reshape(3 * HEADS, D, HD)
    qkvb_h = qkvb_f.reshape(3 * HEADS, HD)

    # fold ln2 gamma/beta into fc1 weight/bias
    fc1w_f = p["ln2g"][:, None] * p["fc1w"]
    fc1b_f = p["ln2b"] @ p["fc1w"] + p["fc1b"]

    vecs = jnp.zeros((VEC_ROWS, MLP), jnp.float32)

    def put(tbl, row, vec):
        return tbl.at[row, :vec.shape[0]].set(vec)

    for i in range(3 * HEADS):
        vecs = put(vecs, _R_QKVB + i, qkvb_h[i])
    vecs = put(vecs, _R_PROJB, p["projb"])
    vecs = put(vecs, _R_FC1B, fc1b_f)
    vecs = put(vecs, _R_FC2B, p["fc2b"])
    vecs = put(vecs, _R_NG, p["ng"])
    vecs = put(vecs, _R_NB, p["nb"])
    return dict(pwf=pwf, pos=pos_img, qkvh=qkvh, projw=p["projw"],
                fc1w=fc1w_f, fc2w=p["fc2w"], vecs=vecs)


def feature_extractor(img, kp):
    """img: (B, C, IMG, IMG) NCHW f32.  Returns ((spatial NCHW, prefix),)."""
    assert img.shape == (B, C, IMG, IMG)
    bb = B  # single grid step on all generations (latency-bound kernel)

    # Patchify + pad to TP rows per image (channel-major patch flattening).
    patches = img.reshape(B, C, GRID, PATCH, GRID, PATCH)
    patches = patches.transpose(0, 2, 4, 1, 3, 5).reshape(B, N, PD)
    slab = jnp.zeros((B, TP, PD), jnp.float32).at[:, :N, :].set(patches)
    slab = slab.reshape(B * TP, PD)
    pos_full = jnp.tile(kp["pos"], (bb, 1))                  # (bb*TP, D)

    weights = (kp["pwf"], pos_full, kp["qkvh"], kp["projw"], kp["fc1w"],
               kp["fc2w"], kp["vecs"])

    def rep_spec(shape):
        nd = len(shape)
        return pl.BlockSpec(shape, lambda i, _nd=nd: (0,) * _nd)

    in_specs = [pl.BlockSpec((bb * TP, PD), lambda i: (i, 0))]
    in_specs += [rep_spec(w.shape) for w in weights]

    tokens = pl.pallas_call(
        functools.partial(vit_kernel, bb=bb),
        out_shape=jax.ShapeDtypeStruct((B * TP, D), jnp.float32),
        grid=(B // bb,),
        in_specs=in_specs,
        out_specs=pl.BlockSpec((bb * TP, D), lambda i: (i, 0)),
        compiler_params=pltpu.CompilerParams(
            dimension_semantics=("arbitrary",)),
    )(slab, *weights)

    # slab token order: rows 0..N-1 = patch tokens, row N = prefix (CLS)
    tokens = tokens.reshape(B, TP, D)
    prefix = tokens[:, N:N + 1, :]                           # (B, 1, D)
    spatial = tokens[:, :N, :].reshape(B, GRID, GRID, D)
    spatial = spatial.transpose(0, 3, 1, 2)                  # NCHW (B, D, g, g)
    return ((spatial, prefix),)


def reference_forward(img, p):
    """Pure-JAX mirror of the original module semantics (validation only)."""
    def ln(x, g, b):
        mu = jnp.mean(x, axis=-1, keepdims=True)
        var = jnp.mean(jnp.square(x - mu), axis=-1, keepdims=True)
        return (x - mu) * jax.lax.rsqrt(var + EPS) * g + b

    patches = img.reshape(B, C, GRID, PATCH, GRID, PATCH)
    patches = patches.transpose(0, 2, 4, 1, 3, 5).reshape(B, N, PD)
    mean_p = jnp.repeat(p["mean"], PATCH * PATCH)
    std_p = jnp.repeat(p["std"], PATCH * PATCH)
    xn = (patches - mean_p) / std_p
    emb = xn @ p["pw"] + p["pb"]
    cls = jnp.broadcast_to(p["cls"][None], (B, 1, D))
    tok = jnp.concatenate([cls, emb], axis=1) + p["pos"][None]

    h1 = ln(tok, p["ln1g"], p["ln1b"])
    qkv = h1 @ p["qkvw"] + p["qkvb"]
    q, k, v = (qkv[..., i * D:(i + 1) * D].reshape(B, T, HEADS, HD)
               .transpose(0, 2, 1, 3) for i in range(3))
    s = jnp.einsum("bhqd,bhkd->bhqk", q, k) * SCALE
    pr = jax.nn.softmax(s, axis=-1)
    o = jnp.einsum("bhqk,bhkd->bhqd", pr, v)
    o = o.transpose(0, 2, 1, 3).reshape(B, T, D)
    tok = tok + (o @ p["projw"] + p["projb"])

    h2 = ln(tok, p["ln2g"], p["ln2b"])
    hid = jax.nn.gelu(h2 @ p["fc1w"] + p["fc1b"], approximate=True)
    tok = tok + (hid @ p["fc2w"] + p["fc2b"])

    out = ln(tok, p["ng"], p["nb"])
    prefix = out[:, :1, :]
    spatial = out[:, 1:, :].reshape(B, GRID, GRID, D).transpose(0, 3, 1, 2)
    return spatial, prefix


if __name__ == "__main__":
    root = jax.random.PRNGKey(0)
    k_params, k_img = jax.random.split(root)
    raw = init_params(k_params)
    kp = pack_params(raw)
    img = jax.random.uniform(k_img, (B, C, IMG, IMG), jnp.float32)

    feats = feature_extractor(img, kp)
    (spatial, prefix), = feats
    jax.block_until_ready((spatial, prefix))

    assert spatial.shape == (B, D, GRID, GRID)
    assert prefix.shape == (B, 1, D)
    assert bool(jnp.all(jnp.isfinite(spatial)))
    assert bool(jnp.all(jnp.isfinite(prefix)))

    ref_spatial, ref_prefix = reference_forward(img, raw)
    err = max(float(jnp.max(jnp.abs(spatial - ref_spatial))),
              float(jnp.max(jnp.abs(prefix - ref_prefix))))
    assert err < 5e-2, f"kernel/reference mismatch: {err}"
    print("KERNEL_OK")
</pallas_src>

<mosaic_0001>
module attributes {stable_mosaic.version = 11 : i64} {
  func.func @vit_kernel(%arg0: i32, %arg1: memref<48x48xf32, #tpu.memory_space<vmem>>, %arg2: memref<48x32xf32, #tpu.memory_space<vmem>>, %arg3: memref<48x32xf32, #tpu.memory_space<vmem>>, %arg4: memref<6x32x16xf32, #tpu.memory_space<vmem>>, %arg5: memref<32x32xf32, #tpu.memory_space<vmem>>, %arg6: memref<32x128xf32, #tpu.memory_space<vmem>>, %arg7: memref<128x32xf32, #tpu.memory_space<vmem>>, %arg8: memref<16x128xf32, #tpu.memory_space<vmem>>, %arg9: memref<48x32xf32, #tpu.memory_space<vmem>>) attributes {dimension_semantics = [#tpu.dimension_semantics<arbitrary>], iteration_bounds = array<i64: 1>, scalar_prefetch = 0 : i64, scratch_operands = 0 : i64, tpu.core_type = #tpu.core_type<tc>, window_params = [{transform_indices = @transform_0, window_bounds = array<i64: 48, 48>}, {pipeline_mode = #tpu.pipeline_mode<synchronous>, transform_indices = @transform_1, window_bounds = array<i64: 48, 32>}, {pipeline_mode = #tpu.pipeline_mode<synchronous>, transform_indices = @transform_2, window_bounds = array<i64: 48, 32>}, {pipeline_mode = #tpu.pipeline_mode<synchronous>, transform_indices = @transform_3, window_bounds = array<i64: 6, 32, 16>}, {pipeline_mode = #tpu.pipeline_mode<synchronous>, transform_indices = @transform_4, window_bounds = array<i64: 32, 32>}, {pipeline_mode = #tpu.pipeline_mode<synchronous>, transform_indices = @transform_5, window_bounds = array<i64: 32, 128>}, {pipeline_mode = #tpu.pipeline_mode<synchronous>, transform_indices = @transform_6, window_bounds = array<i64: 128, 32>}, {pipeline_mode = #tpu.pipeline_mode<synchronous>, transform_indices = @transform_7, window_bounds = array<i64: 16, 128>}, {transform_indices = @transform_8, window_bounds = array<i64: 48, 32>}]} {
    %c0 = arith.constant 0 : index
    %c0_0 = arith.constant 0 : index
    %0 = vector.load %arg1[%c0, %c0_0] : memref<48x48xf32, #tpu.memory_space<vmem>>, vector<48x48xf32>
    %c0_1 = arith.constant 0 : index
    %c0_2 = arith.constant 0 : index
    %1 = vector.load %arg2[%c0_1, %c0_2] : memref<48x32xf32, #tpu.memory_space<vmem>>, vector<48x32xf32>
    %cst = arith.constant dense<0.000000e+00> : vector<48x32xf32>
    %2 = tpu.matmul %0, %1, %cst {dimension_numbers = #tpu.dot_dimension_numbers<[1], [0], [0], [1], [0, 0, 1, 1], [], []>} : vector<48x48xf32>, vector<48x32xf32>, vector<48x32xf32> -> vector<48x32xf32>
    %c0_3 = arith.constant 0 : index
    %c0_4 = arith.constant 0 : index
    %3 = vector.load %arg3[%c0_3, %c0_4] : memref<48x32xf32, #tpu.memory_space<vmem>>, vector<48x32xf32>
    %4 = arith.addf %2, %3 : vector<48x32xf32>
    %c0_5 = arith.constant 0 : index
    %c0_6 = arith.constant 0 : index
    %5 = vector.load %arg9[%c0_5, %c0_6] : memref<48x32xf32, #tpu.memory_space<vmem>>, vector<48x32xf32>
    tpu.vector_store %arg9[%c0_5, %c0_6], %4 {strides = array<i32>} : memref<48x32xf32, #tpu.memory_space<vmem>>, vector<48x32xf32>,
    %6 = tpu.iota {dimensions = array<i32: 0>} : vector<48x48xi32>
    %7 = tpu.iota {dimensions = array<i32: 1>} : vector<48x48xi32>
    %c0_i32 = arith.constant 0 : i32
    %8 = vector.broadcast %c0_i32 : i32 to vector<48x48xi32>
    %9 = arith.cmpi sge, %6, %8 : vector<48x48xi32>
    %c24_i32 = arith.constant 24 : i32
    %10 = vector.broadcast %c24_i32 : i32 to vector<48x48xi32>
    %11 = arith.cmpi slt, %6, %10 : vector<48x48xi32>
    %12 = arith.andi %9, %11 : vector<48x48xi1>
    %c0_i32_7 = arith.constant 0 : i32
    %13 = vector.broadcast %c0_i32_7 : i32 to vector<48x48xi32>
    %14 = arith.cmpi sge, %7, %13 : vector<48x48xi32>
    %15 = arith.andi %12, %14 : vector<48x48xi1>
    %c17_i32 = arith.constant 17 : i32
    %16 = vector.broadcast %c17_i32 : i32 to vector<48x48xi32>
    %17 = arith.cmpi slt, %7, %16 : vector<48x48xi32>
    %18 = arith.andi %15, %17 : vector<48x48xi1>
    %c24_i32_8 = arith.constant 24 : i32
    %19 = vector.broadcast %c24_i32_8 : i32 to vector<48x48xi32>
    %20 = arith.cmpi sge, %6, %19 : vector<48x48xi32>
    %c48_i32 = arith.constant 48 : i32
    %21 = vector.broadcast %c48_i32 : i32 to vector<48x48xi32>
    %22 = arith.cmpi slt, %6, %21 : vector<48x48xi32>
    %23 = arith.andi %20, %22 : vector<48x48xi1>
    %c24_i32_9 = arith.constant 24 : i32
    %24 = vector.broadcast %c24_i32_9 : i32 to vector<48x48xi32>
    %25 = arith.cmpi sge, %7, %24 : vector<48x48xi32>
    %26 = arith.andi %23, %25 : vector<48x48xi1>
    %c41_i32 = arith.constant 41 : i32
    %27 = vector.broadcast %c41_i32 : i32 to vector<48x48xi32>
    %28 = arith.cmpi slt, %7, %27 : vector<48x48xi32>
    %29 = arith.andi %26, %28 : vector<48x48xi1>
    %30 = arith.ori %18, %29 : vector<48x48xi1>
    %cst_10 = arith.constant 0.000000e+00 : f32
    %cst_11 = arith.constant -1.000000e+30 : f32
    %31 = vector.broadcast %cst_10 : f32 to vector<48x48xf32>
    %32 = vector.broadcast %cst_11 : f32 to vector<48x48xf32>
    %33 = arith.select %30, %31, %32 : vector<48x48xi1>, vector<48x48xf32>
    %c0_12 = arith.constant 0 : index
    %c0_13 = arith.constant 0 : index
    %34 = vector.load %arg9[%c0_12, %c0_13] : memref<48x32xf32, #tpu.memory_space<vmem>>, vector<48x32xf32>
    %cst_14 = arith.constant dense<0.000000e+00> : vector<48xf32>
    %35 = vector.multi_reduction <add>, %34, %cst_14 [1] : vector<48x32xf32> to vector<48xf32>
    %36 = vector.shape_cast %35 : vector<48xf32> to vector<48x1xf32>
    %cst_15 = arith.constant 3.200000e+01 : f32
    %37 = vector.broadcast %cst_15 : f32 to vector<48x1xf32>
    %38 = arith.divf %36, %37 : vector<48x1xf32>
    %39 = vector.broadcast %38 : vector<48x1xf32> to vector<48x32xf32>
    %40 = arith.subf %34, %39 : vector<48x32xf32>
    %41 = arith.mulf %40, %40 : vector<48x32xf32>
    %cst_16 = arith.constant dense<0.000000e+00> : vector<48xf32>
    %42 = vector.multi_reduction <add>, %41, %cst_16 [1] : vector<48x32xf32> to vector<48xf32>
    %43 = vector.shape_cast %42 : vector<48xf32> to vector<48x1xf32>
    %cst_17 = arith.constant 3.200000e+01 : f32
    %44 = vector.broadcast %cst_17 : f32 to vector<48x1xf32>
    %45 = arith.divf %43, %44 : vector<48x1xf32>
    %46 = vector.broadcast %38 : vector<48x1xf32> to vector<48x32xf32>
    %47 = arith.subf %34, %46 : vector<48x32xf32>
    %cst_18 = arith.constant 9.99999997E-7 : f32
    %48 = vector.broadcast %cst_18 : f32 to vector<48x1xf32>
    %49 = arith.addf %45, %48 : vector<48x1xf32>
    %50 = math.rsqrt %49 : vector<48x1xf32>
    %51 = vector.broadcast %50 : vector<48x1xf32> to vector<48x32xf32>
    %52 = arith.mulf %47, %51 : vector<48x32xf32>
    %c0_19 = arith.constant 0 : index
    %c0_20 = arith.constant 0 : index
    %c0_21 = arith.constant 0 : index
    %53 = vector.load %arg4[%c0_19, %c0_20, %c0_21] : memref<6x32x16xf32, #tpu.memory_space<vmem>>, vector<1x32x16xf32>
    %54 = vector.shape_cast %53 : vector<1x32x16xf32> to vector<32x16xf32>
    %cst_22 = arith.constant dense<0.000000e+00> : vector<48x16xf32>
    %55 = tpu.matmul %52, %54, %cst_22 {dimension_numbers = #tpu.dot_dimension_numbers<[1], [0], [0], [1], [0, 0, 1, 1], [], []>} : vector<48x32xf32>, vector<32x16xf32>, vector<48x16xf32> -> vector<48x16xf32>
    %c0_23 = arith.constant 0 : index
    %c0_24 = arith.constant 0 : index
    %56 = vector.load %arg8[%c0_23, %c0_24] : memref<16x128xf32, #tpu.memory_space<vmem>>, vector<1x16xf32>
    %57 = vector.broadcast %56 : vector<1x16xf32> to vector<48x16xf32>
    %58 = arith.addf %55, %57 : vector<48x16xf32>
    %c2 = arith.constant 2 : index
    %c0_25 = arith.constant 0 : index
    %c0_26 = arith.constant 0 : index
    %59 = vector.load %arg4[%c2, %c0_25, %c0_26] : memref<6x32x16xf32, #tpu.memory_space<vmem>>, vector<1x32x16xf32>
    %60 = vector.shape_cast %59 : vector<1x32x16xf32> to vector<32x16xf32>
    %cst_27 = arith.constant dense<0.000000e+00> : vector<48x16xf32>
    %61 = tpu.matmul %52, %60, %cst_27 {dimension_numbers = #tpu.dot_dimension_numbers<[1], [0], [0], [1], [0, 0, 1, 1], [], []>} : vector<48x32xf32>, vector<32x16xf32>, vector<48x16xf32> -> vector<48x16xf32>
    %c2_28 = arith.constant 2 : index
    %c0_29 = arith.constant 0 : index
    %62 = vector.load %arg8[%c2_28, %c0_29] : memref<16x128xf32, #tpu.memory_space<vmem>>, vector<1x16xf32>
    %63 = vector.broadcast %62 : vector<1x16xf32> to vector<48x16xf32>
    %64 = arith.addf %61, %63 : vector<48x16xf32>
    %c4 = arith.constant 4 : index
    %c0_30 = arith.constant 0 : index
    %c0_31 = arith.constant 0 : index
    %65 = vector.load %arg4[%c4, %c0_30, %c0_31] : memref<6x32x16xf32, #tpu.memory_space<vmem>>, vector<1x32x16xf32>
    %66 = vector.shape_cast %65 : vector<1x32x16xf32> to vector<32x16xf32>
    %cst_32 = arith.constant dense<0.000000e+00> : vector<48x16xf32>
    %67 = tpu.matmul %52, %66, %cst_32 {dimension_numbers = #tpu.dot_dimension_numbers<[1], [0], [0], [1], [0, 0, 1, 1], [], []>} : vector<48x32xf32>, vector<32x16xf32>, vector<48x16xf32> -> vector<48x16xf32>
    %c4_33 = arith.constant 4 : index
    %c0_34 = arith.constant 0 : index
    %68 = vector.load %arg8[%c4_33, %c0_34] : memref<16x128xf32, #tpu.memory_space<vmem>>, vector<1x16xf32>
    %69 = vector.broadcast %68 : vector<1x16xf32> to vector<48x16xf32>
    %70 = arith.addf %67, %69 : vector<48x16xf32>
    %71 = tpu.transpose %64, [1, 0] : vector<48x16xf32> -> vector<16x48xf32>
    %cst_35 = arith.constant dense<0.000000e+00> : vector<48x48xf32>
    %72 = tpu.matmul %58, %71, %cst_35 {dimension_numbers = #tpu.dot_dimension_numbers<[1], [0], [0], [1], [0, 0, 1, 1], [], []>} : vector<48x16xf32>, vector<16x48xf32>, vector<48x48xf32> -> vector<48x48xf32>
    %73 = arith.addf %72, %33 : vector<48x48xf32>
    %cst_36 = arith.constant dense<0xFF800000> : vector<48xf32>
    %74 = vector.multi_reduction <maximumf>, %73, %cst_36 [1] : vector<48x48xf32> to vector<48xf32>
    %75 = vector.shape_cast %74 : vector<48xf32> to vector<48x1xf32>
    %76 = vector.broadcast %75 : vector<48x1xf32> to vector<48x48xf32>
    %77 = arith.subf %73, %76 : vector<48x48xf32>
    %78 = math.exp %77 : vector<48x48xf32>
    %cst_37 = arith.constant dense<0.000000e+00> : vector<48xf32>
    %79 = vector.multi_reduction <add>, %78, %cst_37 [1] : vector<48x48xf32> to vector<48xf32>
    %80 = vector.shape_cast %79 : vector<48xf32> to vector<48x1xf32>
    %81 = tpu.reciprocal %80 {approx = true} : vector<48x1xf32> -> vector<48x1xf32>
    %82 = vector.broadcast %81 : vector<48x1xf32> to vector<48x48xf32>
    %83 = arith.mulf %78, %82 : vector<48x48xf32>
    %cst_38 = arith.constant dense<0.000000e+00> : vector<48x16xf32>
    %84 = tpu.matmul %83, %70, %cst_38 {dimension_numbers = #tpu.dot_dimension_numbers<[1], [0], [0], [1], [0, 0, 1, 1], [], []>} : vector<48x48xf32>, vector<48x16xf32>, vector<48x16xf32> -> vector<48x16xf32>
    %c0_39 = arith.constant 0 : index
    %c0_40 = arith.constant 0 : index
    %85 = vector.load %arg5[%c0_39, %c0_40] : memref<32x32xf32, #tpu.memory_space<vmem>>, vector<16x32xf32>
    %cst_41 = arith.constant dense<0.000000e+00> : vector<48x32xf32>
    %86 = tpu.matmul %84, %85, %cst_41 {dimension_numbers = #tpu.dot_dimension_numbers<[1], [0], [0], [1], [0, 0, 1, 1], [], []>} : vector<48x16xf32>, vector<16x32xf32>, vector<48x32xf32> -> vector<48x32xf32>
    %c1 = arith.constant 1 : index
    %c0_42 = arith.constant 0 : index
    %c0_43 = arith.constant 0 : index
    %87 = vector.load %arg4[%c1, %c0_42, %c0_43] : memref<6x32x16xf32, #tpu.memory_space<vmem>>, vector<1x32x16xf32>
    %88 = vector.shape_cast %87 : vector<1x32x16xf32> to vector<32x16xf32>
    %cst_44 = arith.constant dense<0.000000e+00> : vector<48x16xf32>
    %89 = tpu.matmul %52, %88, %cst_44 {dimension_numbers = #tpu.dot_dimension_numbers<[1], [0], [0], [1], [0, 0, 1, 1], [], []>} : vector<48x32xf32>, vector<32x16xf32>, vector<48x16xf32> -> vector<48x16xf32>
    %c1_45 = arith.constant 1 : index
    %c0_46 = arith.constant 0 : index
    %90 = vector.load %arg8[%c1_45, %c0_46] : memref<16x128xf32, #tpu.memory_space<vmem>>, vector<1x16xf32>
    %91 = vector.broadcast %90 : vector<1x16xf32> to vector<48x16xf32>
    %92 = arith.addf %89, %91 : vector<48x16xf32>
    %c3 = arith.constant 3 : index
    %c0_47 = arith.constant 0 : index
    %c0_48 = arith.constant 0 : index
    %93 = vector.load %arg4[%c3, %c0_47, %c0_48] : memref<6x32x16xf32, #tpu.memory_space<vmem>>, vector<1x32x16xf32>
    %94 = vector.shape_cast %93 : vector<1x32x16xf32> to vector<32x16xf32>
    %cst_49 = arith.constant dense<0.000000e+00> : vector<48x16xf32>
    %95 = tpu.matmul %52, %94, %cst_49 {dimension_numbers = #tpu.dot_dimension_numbers<[1], [0], [0], [1], [0, 0, 1, 1], [], []>} : vector<48x32xf32>, vector<32x16xf32>, vector<48x16xf32> -> vector<48x16xf32>
    %c3_50 = arith.constant 3 : index
    %c0_51 = arith.constant 0 : index
    %96 = vector.load %arg8[%c3_50, %c0_51] : memref<16x128xf32, #tpu.memory_space<vmem>>, vector<1x16xf32>
    %97 = vector.broadcast %96 : vector<1x16xf32> to vector<48x16xf32>
    %98 = arith.addf %95, %97 : vector<48x16xf32>
    %c5 = arith.constant 5 : index
    %c0_52 = arith.constant 0 : index
    %c0_53 = arith.constant 0 : index
    %99 = vector.load %arg4[%c5, %c0_52, %c0_53] : memref<6x32x16xf32, #tpu.memory_space<vmem>>, vector<1x32x16xf32>
    %100 = vector.shape_cast %99 : vector<1x32x16xf32> to vector<32x16xf32>
    %cst_54 = arith.constant dense<0.000000e+00> : vector<48x16xf32>
    %101 = tpu.matmul %52, %100, %cst_54 {dimension_numbers = #tpu.dot_dimension_numbers<[1], [0], [0], [1], [0, 0, 1, 1], [], []>} : vector<48x32xf32>, vector<32x16xf32>, vector<48x16xf32> -> vector<48x16xf32>
    %c5_55 = arith.constant 5 : index
    %c0_56 = arith.constant 0 : index
    %102 = vector.load %arg8[%c5_55, %c0_56] : memref<16x128xf32, #tpu.memory_space<vmem>>, vector<1x16xf32>
    %103 = vector.broadcast %102 : vector<1x16xf32> to vector<48x16xf32>
    %104 = arith.addf %101, %103 : vector<48x16xf32>
    %105 = tpu.transpose %98, [1, 0] : vector<48x16xf32> -> vector<16x48xf32>
    %cst_57 = arith.constant dense<0.000000e+00> : vector<48x48xf32>
    %106 = tpu.matmul %92, %105, %cst_57 {dimension_numbers = #tpu.dot_dimension_numbers<[1], [0], [0], [1], [0, 0, 1, 1], [], []>} : vector<48x16xf32>, vector<16x48xf32>, vector<48x48xf32> -> vector<48x48xf32>
    %107 = arith.addf %106, %33 : vector<48x48xf32>
    %cst_58 = arith.constant dense<0xFF800000> : vector<48xf32>
    %108 = vector.multi_reduction <maximumf>, %107, %cst_58 [1] : vector<48x48xf32> to vector<48xf32>
    %109 = vector.shape_cast %108 : vector<48xf32> to vector<48x1xf32>
    %110 = vector.broadcast %109 : vector<48x1xf32> to vector<48x48xf32>
    %111 = arith.subf %107, %110 : vector<48x48xf32>
    %112 = math.exp %111 : vector<48x48xf32>
    %cst_59 = arith.constant dense<0.000000e+00> : vector<48xf32>
    %113 = vector.multi_reduction <add>, %112, %cst_59 [1] : vector<48x48xf32> to vector<48xf32>
    %114 = vector.shape_cast %113 : vector<48xf32> to vector<48x1xf32>
    %115 = tpu.reciprocal %114 {approx = true} : vector<48x1xf32> -> vector<48x1xf32>
    %116 = vector.broadcast %115 : vector<48x1xf32> to vector<48x48xf32>
    %117 = arith.mulf %112, %116 : vector<48x48xf32>
    %cst_60 = arith.constant dense<0.000000e+00> : vector<48x16xf32>
    %118 = tpu.matmul %117, %104, %cst_60 {dimension_numbers = #tpu.dot_dimension_numbers<[1], [0], [0], [1], [0, 0, 1, 1], [], []>} : vector<48x48xf32>, vector<48x16xf32>, vector<48x16xf32> -> vector<48x16xf32>
    %c16 = arith.constant 16 : index
    %c0_61 = arith.constant 0 : index
    %119 = vector.load %arg5[%c16, %c0_61] : memref<32x32xf32, #tpu.memory_space<vmem>>, vector<16x32xf32>
    %cst_62 = arith.constant dense<0.000000e+00> : vector<48x32xf32>
    %120 = tpu.matmul %118, %119, %cst_62 {dimension_numbers = #tpu.dot_dimension_numbers<[1], [0], [0], [1], [0, 0, 1, 1], [], []>} : vector<48x16xf32>, vector<16x32xf32>, vector<48x32xf32> -> vector<48x32xf32>
    %121 = arith.addf %86, %120 : vector<48x32xf32>
    %c0_63 = arith.constant 0 : index
    %c0_64 = arith.constant 0 : index
    %122 = vector.load %arg9[%c0_63, %c0_64] : memref<48x32xf32, #tpu.memory_space<vmem>>, vector<48x32xf32>
    %123 = arith.addf %122, %121 : vector<48x32xf32>
    %c6 = arith.constant 6 : index
    %c0_65 = arith.constant 0 : index
    %124 = vector.load %arg8[%c6, %c0_65] : memref<16x128xf32, #tpu.memory_space<vmem>>, vector<1x32xf32>
    %125 = vector.broadcast %124 : vector<1x32xf32> to vector<48x32xf32>
    %126 = arith.addf %123, %125 : vector<48x32xf32>
    %c0_66 = arith.constant 0 : index
    %c0_67 = arith.constant 0 : index
    %127 = vector.load %arg9[%c0_66, %c0_67] : memref<48x32xf32, #tpu.memory_space<vmem>>, vector<48x32xf32>
    tpu.vector_store %arg9[%c0_66, %c0_67], %126 {strides = array<i32>} : memref<48x32xf32, #tpu.memory_space<vmem>>, vector<48x32xf32>,
    %c0_68 = arith.constant 0 : index
    %c0_69 = arith.constant 0 : index
    %128 = vector.load %arg9[%c0_68, %c0_69] : memref<48x32xf32, #tpu.memory_space<vmem>>, vector<48x32xf32>
    %cst_70 = arith.constant dense<0.000000e+00> : vector<48xf32>
    %129 = vector.multi_reduction <add>, %128, %cst_70 [1] : vector<48x32xf32> to vector<48xf32>
    %130 = vector.shape_cast %129 : vector<48xf32> to vector<48x1xf32>
    %cst_71 = arith.constant 3.200000e+01 : f32
    %131 = vector.broadcast %cst_71 : f32 to vector<48x1xf32>
    %132 = arith.divf %130, %131 : vector<48x1xf32>
    %133 = vector.broadcast %132 : vector<48x1xf32> to vector<48x32xf32>
    %134 = arith.subf %128, %133 : vector<48x32xf32>
    %135 = arith.mulf %134, %134 : vector<48x32xf32>
    %cst_72 = arith.constant dense<0.000000e+00> : vector<48xf32>
    %136 = vector.multi_reduction <add>, %135, %cst_72 [1] : vector<48x32xf32> to vector<48xf32>
    %137 = vector.shape_cast %136 : vector<48xf32> to vector<48x1xf32>
    %cst_73 = arith.constant 3.200000e+01 : f32
    %138 = vector.broadcast %cst_73 : f32 to vector<48x1xf32>
    %139 = arith.divf %137, %138 : vector<48x1xf32>
    %140 = vector.broadcast %132 : vector<48x1xf32> to vector<48x32xf32>
    %141 = arith.subf %128, %140 : vector<48x32xf32>
    %cst_74 = arith.constant 9.99999997E-7 : f32
    %142 = vector.broadcast %cst_74 : f32 to vector<48x1xf32>
    %143 = arith.addf %139, %142 : vector<48x1xf32>
    %144 = math.rsqrt %143 : vector<48x1xf32>
    %145 = vector.broadcast %144 : vector<48x1xf32> to vector<48x32xf32>
    %146 = arith.mulf %141, %145 : vector<48x32xf32>
    %c0_75 = arith.constant 0 : index
    %c0_76 = arith.constant 0 : index
    %147 = vector.load %arg6[%c0_75, %c0_76] : memref<32x128xf32, #tpu.memory_space<vmem>>, vector<32x128xf32>
    %cst_77 = arith.constant dense<0.000000e+00> : vector<48x128xf32>
    %148 = tpu.matmul %146, %147, %cst_77 {dimension_numbers = #tpu.dot_dimension_numbers<[1], [0], [0], [1], [0, 0, 1, 1], [], []>} : vector<48x32xf32>, vector<32x128xf32>, vector<48x128xf32> -> vector<48x128xf32>
    %c7 = arith.constant 7 : index
    %c0_78 = arith.constant 0 : index
    %149 = vector.load %arg8[%c7, %c0_78] : memref<16x128xf32, #tpu.memory_space<vmem>>, vector<1x128xf32>
    %150 = vector.broadcast %149 : vector<1x128xf32> to vector<48x128xf32>
    %151 = arith.addf %148, %150 : vector<48x128xf32>
    %152 = arith.mulf %151, %151 : vector<48x128xf32>
    %153 = arith.mulf %151, %152 : vector<48x128xf32>
    %cst_79 = arith.constant 4.471500e-02 : f32
    %154 = vector.broadcast %cst_79 : f32 to vector<48x128xf32>
    %155 = arith.mulf %154, %153 : vector<48x128xf32>
    %156 = arith.addf %151, %155 : vector<48x128xf32>
    %cst_80 = arith.constant 0.797884583 : f32
    %157 = vector.broadcast %cst_80 : f32 to vector<48x128xf32>
    %158 = arith.mulf %157, %156 : vector<48x128xf32>
    %159 = math.tanh %158 : vector<48x128xf32>
    %cst_81 = arith.constant 1.000000e+00 : f32
    %160 = vector.broadcast %cst_81 : f32 to vector<48x128xf32>
    %161 = arith.addf %160, %159 : vector<48x128xf32>
    %cst_82 = arith.constant 5.000000e-01 : f32
    %162 = vector.broadcast %cst_82 : f32 to vector<48x128xf32>
    %163 = arith.mulf %162, %161 : vector<48x128xf32>
    %164 = arith.mulf %151, %163 : vector<48x128xf32>
    %c0_83 = arith.constant 0 : index
    %c0_84 = arith.constant 0 : index
    %165 = vector.load %arg7[%c0_83, %c0_84] : memref<128x32xf32, #tpu.memory_space<vmem>>, vector<128x32xf32>
    %cst_85 = arith.constant dense<0.000000e+00> : vector<48x32xf32>
    %166 = tpu.matmul %164, %165, %cst_85 {dimension_numbers = #tpu.dot_dimension_numbers<[1], [0], [0], [1], [0, 0, 1, 1], [], []>} : vector<48x128xf32>, vector<128x32xf32>, vector<48x32xf32> -> vector<48x32xf32>
    %c8 = arith.constant 8 : index
    %c0_86 = arith.constant 0 : index
    %167 = vector.load %arg8[%c8, %c0_86] : memref<16x128xf32, #tpu.memory_space<vmem>>, vector<1x32xf32>
    %168 = vector.broadcast %167 : vector<1x32xf32> to vector<48x32xf32>
    %169 = arith.addf %166, %168 : vector<48x32xf32>
    %c0_87 = arith.constant 0 : index
    %c0_88 = arith.constant 0 : index
    %170 = vector.load %arg9[%c0_87, %c0_88] : memref<48x32xf32, #tpu.memory_space<vmem>>, vector<48x32xf32>
    %171 = arith.addf %170, %169 : vector<48x32xf32>
    %c0_89 = arith.constant 0 : index
    %c0_90 = arith.constant 0 : index
    %172 = vector.load %arg9[%c0_89, %c0_90] : memref<48x32xf32, #tpu.memory_space<vmem>>, vector<48x32xf32>
    tpu.vector_store %arg9[%c0_89, %c0_90], %171 {strides = array<i32>} : memref<48x32xf32, #tpu.memory_space<vmem>>, vector<48x32xf32>,
    %c0_91 = arith.constant 0 : index
    %c0_92 = arith.constant 0 : index
    %173 = vector.load %arg9[%c0_91, %c0_92] : memref<48x32xf32, #tpu.memory_space<vmem>>, vector<48x32xf32>
    %cst_93 = arith.constant dense<0.000000e+00> : vector<48xf32>
    %174 = vector.multi_reduction <add>, %173, %cst_93 [1] : vector<48x32xf32> to vector<48xf32>
    %175 = vector.shape_cast %174 : vector<48xf32> to vector<48x1xf32>
    %cst_94 = arith.constant 3.200000e+01 : f32
    %176 = vector.broadcast %cst_94 : f32 to vector<48x1xf32>
    %177 = arith.divf %175, %176 : vector<48x1xf32>
    %178 = vector.broadcast %177 : vector<48x1xf32> to vector<48x32xf32>
    %179 = arith.subf %173, %178 : vector<48x32xf32>
    %180 = arith.mulf %179, %179 : vector<48x32xf32>
    %cst_95 = arith.constant dense<0.000000e+00> : vector<48xf32>
    %181 = vector.multi_reduction <add>, %180, %cst_95 [1] : vector<48x32xf32> to vector<48xf32>
    %182 = vector.shape_cast %181 : vector<48xf32> to vector<48x1xf32>
    %cst_96 = arith.constant 3.200000e+01 : f32
    %183 = vector.broadcast %cst_96 : f32 to vector<48x1xf32>
    %184 = arith.divf %182, %183 : vector<48x1xf32>
    %185 = vector.broadcast %177 : vector<48x1xf32> to vector<48x32xf32>
    %186 = arith.subf %173, %185 : vector<48x32xf32>
    %cst_97 = arith.constant 9.99999997E-7 : f32
    %187 = vector.broadcast %cst_97 : f32 to vector<48x1xf32>
    %188 = arith.addf %184, %187 : vector<48x1xf32>
    %189 = math.rsqrt %188 : vector<48x1xf32>
    %190 = vector.broadcast %189 : vector<48x1xf32> to vector<48x32xf32>
    %191 = arith.mulf %186, %190 : vector<48x32xf32>
    %c9 = arith.constant 9 : index
    %c0_98 = arith.constant 0 : index
    %192 = vector.load %arg8[%c9, %c0_98] : memref<16x128xf32, #tpu.memory_space<vmem>>, vector<1x32xf32>
    %193 = vector.broadcast %192 : vector<1x32xf32> to vector<48x32xf32>
    %194 = arith.mulf %191, %193 : vector<48x32xf32>
    %c10 = arith.constant 10 : index
    %c0_99 = arith.constant 0 : index
    %195 = vector.load %arg8[%c10, %c0_99] : memref<16x128xf32, #tpu.memory_space<vmem>>, vector<1x32xf32>
    %196 = vector.broadcast %195 : vector<1x32xf32> to vector<48x32xf32>
    %197 = arith.addf %194, %196 : vector<48x32xf32>
    %c0_100 = arith.constant 0 : index
    %c0_101 = arith.constant 0 : index
    %198 = vector.load %arg9[%c0_100, %c0_101] : memref<48x32xf32, #tpu.memory_space<vmem>>, vector<48x32xf32>
    tpu.vector_store %arg9[%c0_100, %c0_101], %197 {strides = array<i32>} : memref<48x32xf32, #tpu.memory_space<vmem>>, vector<48x32xf32>,
    return
  }
  func.func @transform_0(%arg0: i32) -> (i32, i32) {
    %c0_i32 = arith.constant 0 : i32
    %c0_i32_0 = arith.constant 0 : i32
    return %arg0, %c0_i32 : i32, i32
  }
  func.func @transform_1(%arg0: i32) -> (i32, i32) {
    %c0_i32 = arith.constant 0 : i32
    %c0_i32_0 = arith.constant 0 : i32
    %c0_i32_1 = arith.constant 0 : i32
    return %c0_i32, %c0_i32_0 : i32, i32
  }
  func.func @transform_2(%arg0: i32) -> (i32, i32) {
    %c0_i32 = arith.constant 0 : i32
    %c0_i32_0 = arith.constant 0 : i32
    %c0_i32_1 = arith.constant 0 : i32
    return %c0_i32, %c0_i32_0 : i32, i32
  }
  func.func @transform_3(%arg0: i32) -> (i32, i32, i32) {
    %c0_i32 = arith.constant 0 : i32
    %c0_i32_0 = arith.constant 0 : i32
    %c0_i32_1 = arith.constant 0 : i32
    %c0_i32_2 = arith.constant 0 : i32
    return %c0_i32, %c0_i32_0, %c0_i32_1 : i32, i32, i32
  }
  func.func @transform_4(%arg0: i32) -> (i32, i32) {
    %c0_i32 = arith.constant 0 : i32
    %c0_i32_0 = arith.constant 0 : i32
    %c0_i32_1 = arith.constant 0 : i32
    return %c0_i32, %c0_i32_0 : i32, i32
  }
  func.func @transform_5(%arg0: i32) -> (i32, i32) {
    %c0_i32 = arith.constant 0 : i32
    %c0_i32_0 = arith.constant 0 : i32
    %c0_i32_1 = arith.constant 0 : i32
    return %c0_i32, %c0_i32_0 : i32, i32
  }
  func.func @transform_6(%arg0: i32) -> (i32, i32) {
    %c0_i32 = arith.constant 0 : i32
    %c0_i32_0 = arith.constant 0 : i32
    %c0_i32_1 = arith.constant 0 : i32
    return %c0_i32, %c0_i32_0 : i32, i32
  }
  func.func @transform_7(%arg0: i32) -> (i32, i32) {
    %c0_i32 = arith.constant 0 : i32
    %c0_i32_0 = arith.constant 0 : i32
    %c0_i32_1 = arith.constant 0 : i32
    return %c0_i32, %c0_i32_0 : i32, i32
  }
  func.func @transform_8(%arg0: i32) -> (i32, i32) {
    %c0_i32 = arith.constant 0 : i32
    %c0_i32_0 = arith.constant 0 : i32
    return %arg0, %c0_i32 : i32, i32
  }
}

</mosaic_0001>

<bundles_post_ra>
// kernel: tpu_custom_call.1
= control target key start
LH: loop header
LB: loop body
LE: loop exit
PB: predicated region body
PF: predicated region fallthrough
CT: control target
= control target key end

     0   :  { %vm47_vm0 = vcmask 392192   ;;  %vm101_vm1 = vcmask 261120   ;;  %v1845_v42 = vmov 32.0   ;;  %s2686_s1 = inlined_call_operand.vmem [shape: f32[48,32], index: 1, kind: input, shape index: {}]   ;;  %s2687_s0 = inlined_call_operand.vmem [shape: f32[48,48], index: 0, kind: input, shape index: {}]   ;;  %s2688_s2 = inlined_call_operand.vmem [shape: f32[48,32], index: 2, kind: input, shape index: {}]   ;;  %s2689_s8 = inlined_call_operand.vmem [shape: f32[48,32], index: 8, kind: output, shape index: {}]   ;;  %s2690_s3 = inlined_call_operand.vmem [shape: f32[6,32,16], index: 3, kind: input, shape index: {}]   ;;  %s2691_s7 = inlined_call_operand.vmem [shape: f32[16,128], index: 7, kind: input, shape index: {}]   ;;  %s2692_s4 = inlined_call_operand.vmem [shape: f32[32,32], index: 4, kind: input, shape index: {}]   ;;  %s2693_s5 = inlined_call_operand.vmem [shape: f32[32,128], index: 5, kind: input, shape index: {}]   ;;  %s2694_s6 = inlined_call_operand.vmem [shape: f32[128,32], index: 6, kind: input, shape index: {}]  }
   0x1   :  { %v40_v0 = vld [vmem:[%s2686_s1 + $0x28] sm:$0xff]  ;;  %v39_v1 = vld [vmem:[%s2686_s1 + $0x20] sm:$0xff]  ;;  %v38_v2 = vld [vmem:[%s2686_s1 + $0x18] sm:$0xff]  ;;  %1741 = vrcp.f32 %v1845_v42 }
   0x2   :  { %76 = vmatpush.msra.mxu0 %v40_v0  ;;  %v37_v3 = vld [vmem:[%s2686_s1 + $0x10] sm:$0xff]  ;;  %v36_v4 = vld [vmem:[%s2686_s1 + $0x8] sm:$0xff]  ;;  %v35_v5 = vld [vmem:[%s2686_s1] sm:$0xff] }
   0x3   :  { %v29_v6 = vld [vmem:[%s2687_s0] sm:$0xff]  ;;  %v30_v7 = vld [vmem:[%s2687_s0 + $0x8] sm:$0xff]  ;;  %v31_v8 = vld [vmem:[%s2687_s0 + $0x10] sm:$0xff] }
   0x4   :  { %77 = vmatpush.msra.mxu0 %v39_v1  ;;  %v32_v9 = vld [vmem:[%s2687_s0 + $0x18] sm:$0xff]  ;;  %v33_v10 = vld [vmem:[%s2687_s0 + $0x20] sm:$0xff]  ;;  %v34_v11 = vld [vmem:[%s2687_s0 + $0x28] sm:$0xff] }
   0x5   :  { %v41_v12 = vld [vmem:[%s2688_s2] sm:$0xff]  ;;  %v42_v15 = vld [vmem:[%s2688_s2 + $0x8] sm:$0xff]  ;;  %v43_v20 = vld [vmem:[%s2688_s2 + $0x10] sm:$0xff] }
   0x6   :  { %78 = vmatpush.msra.mxu0 %v38_v2  ;;  %v44_v25 = vld [vmem:[%s2688_s2 + $0x18] sm:$0xff]  ;;  %v45_v30 = vld [vmem:[%s2688_s2 + $0x20] sm:$0xff]  ;;  %v46_v35 = vld [vmem:[%s2688_s2 + $0x28] sm:$0xff] }
   0x7   :  { %v1742_v43 = vpop.eup %1741 }
   0x8   :  { %79 = vmatpush.msra.mxu0 %v37_v3  ;;  %v218_v44 = vmul.f32 32.0, %v1742_v43  ;;  %vm222_vm2 = vweird.f32 %v1742_v43 }
   0xa   :  { %80 = vmatpush.msra.mxu0 %v36_v4  ;;  %v219_v45 = vsub.f32 1.0, %v218_v44 }
   0xc   :  { %81 = vmatpush.msra.mxu0 %v35_v5  ;;  %v220_v46 = vmul.f32 %v1742_v43, %v219_v45 }
   0xd   :  { %1598 = vmatmul.msk.f32.vlgmr.msra.gmra.mxu0 %vm47_vm0, %v29_v6 }
   0xe   :  { %v221_v47 = vadd.f32 %v1742_v43, %v220_v46 }
  0x10   :  { %v2000_v48 = vsel %vm222_vm2, %v1742_v43, %v221_v47  ;;  %v1661_v47 = vld [vmem:[%s2690_s3 + $0x78] sm:$0xff] }
  0x15   :  { %1599 = vmatmul.msk.f32.gmra.mxu0 %vm47_vm0, %v30_v7 }
  0x1d   :  { %1600 = vmatmul.msk.f32.gmra.mxu0 %vm47_vm0, %v31_v8 }
  0x25   :  { %1601 = vmatmul.msk.f32.gmra.mxu0 %vm47_vm0, %v32_v9 }
  0x2d   :  { %1602 = vmatmul.msk.f32.gmra.mxu0 %vm47_vm0, %v33_v10 }
  0x35   :  { %1603 = vmatmul.msk.f32.gmra.mxu0 %vm47_vm0, %v34_v11 }
  0x8a   :  { %v83_v13 = vpop.f32.mrf.mxu0 }
  0x8b   :  { %v84_v14 = vadd.f32 %v83_v13, %v41_v12 }
  0x8d   :  { %102 = vst.msk [vmem:[%s2689_s8] sm:$0xff] %vm101_vm1, %v84_v14 }
  0x92   :  { %v86_v16 = vpop.f32.mrf.mxu0 }
  0x93   :  { %v87_v17 = vadd.f32 %v86_v16, %v42_v15  ;;  %v341_v15 = vld [vmem:[%s2690_s3 + $0x18] sm:$0xff] }
  0x94   :  { %v193_v18 = vld [vmem:[%s2689_s8] sm:$0xff]  ;;  %v1613_v16 = vld [vmem:[%s2690_s3 + $0x58] sm:$0xff]  ;;  %374 = vmatpush.msrb.mxu0 %v341_v15  ;;  %1714 = vmatpush.msra.mxu1 %v341_v15 }
  0x95   :  { %103 = vst.msk [vmem:[%s2689_s8 + $0x8] sm:$0xff] %vm101_vm1, %v87_v17  ;;  %v199_v19 = vsel %vm101_vm1, %v193_v18, 0.0  ;;  %416 = vmatpush.msra.mxu2 %v1613_v16  ;;  %v340_v17 = vld [vmem:[%s2690_s3 + $0x10] sm:$0xff] }
  0x96   :  { %200 = vadd.xlane.f32.xlu0 %v199_v19  ;;  %375 = vmatpush.msrb.mxu0 %v340_v17  ;;  %v339_v19 = vld [vmem:[%s2690_s3 + $0x8] sm:$0xff] }
  0x97   :  { %1715 = vmatpush.msra.mxu1 %v340_v17 }
  0x98   :  { %376 = vmatpush.msrb.mxu0 %v339_v19 }
  0x99   :  { %1716 = vmatpush.msra.mxu1 %v339_v19  ;;  %v1648_v19 = vld [vmem:[%s2690_s3 + $0x20] sm:$0xff] }
  0x9a   :  { %v89_v21 = vpop.f32.mrf.mxu0 }
  0x9b   :  { %v90_v22 = vadd.f32 %v89_v21, %v43_v20  ;;  %v1611_v20 = vld [vmem:[%s2690_s3 + $0x48] sm:$0xff]  ;;  %v338_v21 = vld [vmem:[%s2690_s3] sm:$0xff] }
  0x9c   :  { %v194_v23 = vld [vmem:[%s2689_s8 + $0x8] sm:$0xff]  ;;  %377 = vmatpush.msrb.mxu0 %v338_v21  ;;  %1717 = vmatpush.msra.mxu1 %v338_v21 }
  0x9d   :  { %104 = vst.msk [vmem:[%s2689_s8 + $0x10] sm:$0xff] %vm101_vm1, %v90_v22  ;;  %v202_v24 = vsel %vm101_vm1, %v194_v23, 0.0  ;;  %v1610_v22 = vld [vmem:[%s2690_s3 + $0x40] sm:$0xff] }
  0x9e   :  { %203 = vadd.xlane.f32.xlu0 %v202_v24  ;;  %v1622_v24 = vld [vmem:[%s2690_s3 + $0x90] sm:$0xff] }
  0xa2   :  { %v92_v26 = vpop.f32.mrf.mxu0 }
  0xa3   :  { %v93_v27 = vadd.f32 %v92_v26, %v44_v25  ;;  %v1621_v25 = vld [vmem:[%s2690_s3 + $0x88] sm:$0xff]  ;;  %v1620_v26 = vld [vmem:[%s2690_s3 + $0x80] sm:$0xff] }
  0xa4   :  { %v195_v28 = vld [vmem:[%s2689_s8 + $0x10] sm:$0xff] }
  0xa5   :  { %105 = vst.msk [vmem:[%s2689_s8 + $0x18] sm:$0xff] %vm101_vm1, %v93_v27  ;;  %v205_v29 = vsel %vm101_vm1, %v195_v28, 0.0 }
  0xa6   :  { %206 = vadd.xlane.f32.xlu1 %v205_v29 }
  0xaa   :  { %v95_v31 = vpop.f32.mrf.mxu0 }
  0xab   :  { %v96_v32 = vadd.f32 %v95_v31, %v45_v30 }
  0xac   :  { %v196_v33 = vld [vmem:[%s2689_s8 + $0x18] sm:$0xff] }
  0xad   :  { %106 = vst.msk [vmem:[%s2689_s8 + $0x20] sm:$0xff] %vm101_vm1, %v96_v32  ;;  %v208_v34 = vsel %vm101_vm1, %v196_v33, 0.0 }
  0xae   :  { %209 = vadd.xlane.f32.xlu1 %v208_v34 }
  0xb2   :  { %v98_v36 = vpop.f32.mrf.mxu0 }
  0xb3   :  { %v99_v37 = vadd.f32 %v98_v36, %v46_v35 }
  0xb4   :  { %v197_v38 = vld [vmem:[%s2689_s8 + $0x20] sm:$0xff] }
  0xb5   :  { %107 = vst.msk [vmem:[%s2689_s8 + $0x28] sm:$0xff] %vm101_vm1, %v99_v37  ;;  %v211_v39 = vsel %vm101_vm1, %v197_v38, 0.0 }
  0xb6   :  { %212 = vadd.xlane.f32.xlu2 %v211_v39 }
  0xbc   :  { %v198_v40 = vld [vmem:[%s2689_s8 + $0x28] sm:$0xff] }
  0xbd   :  { %v214_v41 = vsel %vm101_vm1, %v198_v40, 0.0 }
  0xbe   :  { %215 = vadd.xlane.f32.xlu2 %v214_v41 }
 0x109   :  { %v201_v49 = vpop.xlane.xlu0 %200 }
 0x10a   :  { %v224_v50 = vmul.f32 %v2000_v48, %v201_v49 }
 0x10c   :  { %v2003_v51 = vsub.f32 %v193_v18, %v224_v50  ;;  %v1612_v18 = vld [vmem:[%s2690_s3 + $0x50] sm:$0xff] }
 0x10d   :  { %417 = vmatpush.msra.mxu2 %v1612_v18 }
 0x10e   :  { %v236_v52 = vmul.f32 %v2003_v51, %v2003_v51 }
 0x10f   :  { %418 = vmatpush.msra.mxu2 %v1611_v20 }
 0x110   :  { %v242_v53 = vsel %vm101_vm1, %v236_v52, 0.0 }
 0x111   :  { %243 = vadd.xlane.f32.xlu0 %v242_v53  ;;  %v204_v54 = vpop.xlane.xlu0 %203  ;;  %419 = vmatpush.msra.mxu2 %v1610_v22  ;;  %v1660_v53 = vld [vmem:[%s2690_s3 + $0x70] sm:$0xff] }
 0x112   :  { %v225_v55 = vmul.f32 %v2000_v48, %v204_v54 }
 0x114   :  { %v2009_v56 = vsub.f32 %v194_v23, %v225_v55  ;;  %v1623_v23 = vld [vmem:[%s2690_s3 + $0x98] sm:$0xff] }
 0x115   :  { %1718 = vmatpush.msra.mxu3 %v1623_v23  ;;  %458 = vmatpush.msra.mxu0 %v1623_v23 }
 0x116   :  { %v237_v57 = vmul.f32 %v2009_v56, %v2009_v56 }
 0x117   :  { %1719 = vmatpush.msra.mxu3 %v1622_v24  ;;  %459 = vmatpush.msra.mxu0 %v1622_v24 }
 0x118   :  { %v245_v58 = vsel %vm101_vm1, %v237_v57, 0.0  ;;  %v1659_v57 = vld [vmem:[%s2690_s3 + $0x68] sm:$0xff] }
 0x119   :  { %v207_v59 = vpop.xlane.xlu1 %206  ;;  %246 = vadd.xlane.f32.xlu1 %v245_v58  ;;  %1720 = vmatpush.msra.mxu3 %v1621_v25 }
 0x11a   :  { %v226_v60 = vmul.f32 %v2000_v48, %v207_v59  ;;  %460 = vmatpush.msra.mxu0 %v1621_v25 }
 0x11b   :  { %1721 = vmatpush.msra.mxu3 %v1620_v26 }
 0x11c   :  { %v2015_v61 = vsub.f32 %v195_v28, %v226_v60  ;;  %461 = vmatpush.msra.mxu0 %v1620_v26  ;;  %v1658_v60 = vld [vmem:[%s2690_s3 + $0x60] sm:$0xff] }
 0x11e   :  { %v238_v62 = vmul.f32 %v2015_v61, %v2015_v61 }
 0x120   :  { %v248_v63 = vsel %vm101_vm1, %v238_v62, 0.0 }
 0x121   :  { %249 = vadd.xlane.f32.xlu2 %v248_v63  ;;  %v210_v0 = vpop.xlane.xlu1 %209 }
 0x122   :  { %v227_v1 = vmul.f32 %v2000_v48, %v210_v0 }
 0x124   :  { %v2021_v2 = vsub.f32 %v196_v33, %v227_v1 }
 0x126   :  { %v239_v3 = vmul.f32 %v2021_v2, %v2021_v2 }
 0x128   :  { %v251_v4 = vsel %vm101_vm1, %v239_v3, 0.0 }
 0x129   :  { %v213_v5 = vpop.xlane.xlu2 %212  ;;  %252 = vadd.xlane.f32.xlu0 %v251_v4 }
 0x12a   :  { %v228_v6 = vmul.f32 %v2000_v48, %v213_v5 }
 0x12c   :  { %v2027_v7 = vsub.f32 %v197_v38, %v228_v6  ;;  %v1650_v6 = vld [vmem:[%s2690_s3 + $0x30] sm:$0xff] }
 0x12e   :  { %v240_v8 = vmul.f32 %v2027_v7, %v2027_v7 }
 0x130   :  { %v254_v9 = vsel %vm101_vm1, %v240_v8, 0.0 }
 0x131   :  { %v216_v10 = vpop.xlane.xlu2 %215  ;;  %255 = vadd.xlane.f32.xlu1 %v254_v9 }
 0x132   :  { %v229_v11 = vmul.f32 %v2000_v48, %v216_v10 }
 0x134   :  { %v2033_v12 = vsub.f32 %v198_v40, %v229_v11 }
 0x136   :  { %v241_v13 = vmul.f32 %v2033_v12, %v2033_v12 }
 0x138   :  { %v257_v14 = vsel %vm101_vm1, %v241_v13, 0.0  ;;  %v1649_v13 = vld [vmem:[%s2690_s3 + $0x28] sm:$0xff] }
 0x139   :  { %258 = vadd.xlane.f32.xlu2 %v257_v14 }
 0x184   :  { %v244_v27 = vpop.xlane.xlu0 %243 }
 0x185   :  { %v260_v28 = vmul.f32 %v244_v27, %v2000_v48 }
 0x187   :  { %v266_v29 = vadd.f32 1e-06, %v260_v28 }
 0x189   :  { %1743 = vrsqrt.f32 %v266_v29  ;;  %vm278_vm4 = vweird.f32 %v266_v29 }
 0x18c   :  { %v247_v30 = vpop.xlane.xlu1 %246 }
 0x18d   :  { %v261_v31 = vmul.f32 %v247_v30, %v2000_v48 }
 0x18f   :  { %v1744_v32 = vpop.eup %1743  ;;  %v267_v33 = vadd.f32 1e-06, %v261_v31 }
 0x190   :  { %v273_v34 = vmul.f32 %v1744_v32, %v266_v29  ;;  %vm279_vm3 = vweird.f32 %v1744_v32 }
 0x191   :  { %1745 = vrsqrt.f32 %v267_v33  ;;  %vm280_vm5 = vmor %vm278_vm4, %vm279_vm3  ;;  %vm288_vm7 = vweird.f32 %v267_v33 }
 0x192   :  { %v274_v35 = vmul.f32 %v1744_v32, %v273_v34 }
 0x194   :  { %v275_v36 = vmul.f32 0.5, %v274_v35  ;;  %v250_v37 = vpop.xlane.xlu2 %249 }
 0x195   :  { %v262_v38 = vmul.f32 %v250_v37, %v2000_v48 }
 0x196   :  { %v276_v39 = vsub.f32 1.5, %v275_v36 }
 0x197   :  { %v1746_v40 = vpop.eup %1745  ;;  %v268_v41 = vadd.f32 1e-06, %v262_v38 }
 0x198   :  { %v277_v42 = vmul.f32 %v1744_v32, %v276_v39  ;;  %v283_v43 = vmul.f32 %v1746_v40, %v267_v33  ;;  %vm289_vm6 = vweird.f32 %v1746_v40 }
 0x199   :  { %1747 = vrsqrt.f32 %v268_v41  ;;  %vm290_vm8 = vmor %vm288_vm7, %vm289_vm6  ;;  %vm298_vm10 = vweird.f32 %v268_v41  ;;  %vm481_vm7 = vcmask 130048  }
 0x19a   :  { %v281_v44 = vsel %vm280_vm5, %v1744_v32, %v277_v42  ;;  %v284_v45 = vmul.f32 %v1746_v40, %v283_v43 }
 0x19b   :  { %v2078_v46 = vmul.f32 %v281_v44, %v2003_v51 }
 0x19c   :  { %v285_v49 = vmul.f32 0.5, %v284_v45  ;;  %v253_v50 = vpop.xlane.xlu0 %252 }
 0x19d   :  { %v263_v52 = vmul.f32 %v253_v50, %v2000_v48  ;;  %1604 = vmatmul.msk.f32.vlgmr.msrb.gmra.mxu0 %vm101_vm1, %v2078_v46  ;;  %1614 = vmatmul.msk.f32.vlgmr.msra.gmra.mxu2 %vm101_vm1, %v2078_v46 }
 0x19e   :  { %v286_v51 = vsub.f32 1.5, %v285_v49  ;;  %735 = vmatpush.msrb.mxu0 %v1661_v47 }
 0x19f   :  { %v1748_v54 = vpop.eup %1747  ;;  %v269_v55 = vadd.f32 1e-06, %v263_v52 }
 0x1a0   :  { %v287_v58 = vmul.f32 %v1746_v40, %v286_v51  ;;  %v293_v59 = vmul.f32 %v1748_v54, %v268_v41  ;;  %736 = vmatpush.msrb.mxu0 %v1660_v53  ;;  %vm299_vm9 = vweird.f32 %v1748_v54 }
 0x1a1   :  { %1749 = vrsqrt.f32 %v269_v55  ;;  %vm300_vm11 = vmor %vm298_vm10, %vm299_vm9  ;;  %vm308_vm13 = vweird.f32 %v269_v55 }
 0x1a2   :  { %v291_v62 = vsel %vm290_vm8, %v1746_v40, %v287_v58  ;;  %v294_v63 = vmul.f32 %v1748_v54, %v293_v59  ;;  %737 = vmatpush.msrb.mxu0 %v1659_v57  ;;  %v1732_v57 = vld [vmem:[%s2691_s7 + $0x4] ss:$0 sm:$0xff] }
 0x1a3   :  { %v2098_v0 = vmul.f32 %v291_v62, %v2009_v56  ;;  %v1651_v56 = vld [vmem:[%s2690_s3 + $0x38] sm:$0xff] }
 0x1a4   :  { %v295_v1 = vmul.f32 0.5, %v294_v63  ;;  %v256_v3 = vpop.xlane.xlu1 %255  ;;  %738 = vmatpush.msrb.mxu0 %v1658_v60  ;;  %693 = vmatpush.msrb.mxu3 %v1651_v56 }
 0x1a5   :  { %v264_v4 = vmul.f32 %v256_v3, %v2000_v48  ;;  %1605 = vmatmul.msk.f32.gmra.mxu0 %vm101_vm1, %v2098_v0  ;;  %1615 = vmatmul.msk.f32.gmra.mxu2 %vm101_vm1, %v2098_v0 }
 0x1a6   :  { %v296_v5 = vsub.f32 1.5, %v295_v1  ;;  %1625 = vmatmul.msk.f32.vlgmr.msra.gmra.mxu3 %vm101_vm1, %v2098_v0 }
 0x1a7   :  { %v1750_v8 = vpop.eup %1749  ;;  %v270_v9 = vadd.f32 1e-06, %v264_v4  ;;  %694 = vmatpush.msrb.mxu3 %v1650_v6 }
 0x1a8   :  { %v297_v10 = vmul.f32 %v1748_v54, %v296_v5  ;;  %v303_v11 = vmul.f32 %v1750_v8, %v269_v55  ;;  %vm309_vm12 = vweird.f32 %v1750_v8  ;;  %v1731_v55 = vld [vmem:[%s2691_s7 + $0x2] ss:$0 sm:$0xff] }
 0x1a9   :  { %1751 = vrsqrt.f32 %v270_v9  ;;  %695 = vmatpush.msrb.mxu3 %v1649_v13  ;;  %vm310_vm14 = vmor %vm308_vm13, %vm309_vm12  ;;  %vm318_vm2 = vweird.f32 %v270_v9 }
 0x1aa   :  { %v301_v14 = vsel %vm300_vm11, %v1748_v54, %v297_v10  ;;  %v304_v15 = vmul.f32 %v1750_v8, %v303_v11 }
 0x1ab   :  { %v2117_v16 = vmul.f32 %v301_v14, %v2015_v61  ;;  %696 = vmatpush.msrb.mxu3 %v1648_v19  ;;  %v1730_v14 = vld [vmem:[%s2691_s7] ss:$0 sm:$0xff] }
 0x1ac   :  { %v305_v17 = vmul.f32 0.5, %v304_v15  ;;  %v259_v18 = vpop.xlane.xlu2 %258 }
 0x1ad   :  { %v265_v20 = vmul.f32 %v259_v18, %v2000_v48  ;;  %1606 = vmatmul.msk.f32.gmra.mxu0 %vm101_vm1, %v2117_v16  ;;  %1616 = vmatmul.msk.f32.gmra.mxu2 %vm101_vm1, %v2117_v16  ;;  %v1733_v18 = vld [vmem:[%s2691_s7 + $0x3] ss:$0 sm:$0xff] }
 0x1ae   :  { %v306_v21 = vsub.f32 1.5, %v305_v17  ;;  %1626 = vmatmul.msk.f32.gmra.mxu3 %vm101_vm1, %v2117_v16 }
 0x1af   :  { %v1752_v61 = vpop.eup %1751  ;;  %v271_v22 = vadd.f32 1e-06, %v265_v20 }
 0x1b0   :  { %v307_v23 = vmul.f32 %v1750_v8, %v306_v21  ;;  %v313_v24 = vmul.f32 %v1752_v61, %v270_v9  ;;  %vm319_vm15 = vweird.f32 %v1752_v61 }
 0x1b1   :  { %1753 = vrsqrt.f32 %v271_v22  ;;  %vm320_vm3 = vmor %vm318_vm2, %vm319_vm15  ;;  %vm328_vm5 = vweird.f32 %v271_v22 }
 0x1b2   :  { %v311_v25 = vsel %vm310_vm14, %v1750_v8, %v307_v23  ;;  %v314_v26 = vmul.f32 %v1752_v61, %v313_v24 }
 0x1b3   :  { %v2130_v27 = vmul.f32 %v311_v25, %v2021_v2 }
 0x1b4   :  { %v315_v28 = vmul.f32 0.5, %v314_v26 }
 0x1b5   :  { %1607 = vmatmul.msk.f32.vlgmr.msra.gmra.mxu1 %vm101_vm1, %v2130_v27  ;;  %1617 = vmatmul.msk.f32.gmra.mxu2 %vm101_vm1, %v2130_v27 }
 0x1b6   :  { %v316_v29 = vsub.f32 1.5, %v315_v28  ;;  %1624 = vmatmul.msk.f32.vlgmr.msra.gmra.mxu0 %vm101_vm1, %v2078_v46  ;;  %1627 = vmatmul.msk.f32.gmra.mxu3 %vm101_vm1, %v2130_v27 }
 0x1b7   :  { %v1754_v30 = vpop.eup %1753 }
 0x1b8   :  { %v317_v31 = vmul.f32 %v1752_v61, %v316_v29  ;;  %v323_v2 = vmul.f32 %v1754_v30, %v271_v22  ;;  %vm329_vm4 = vweird.f32 %v1754_v30 }
 0x1b9   :  { %vm330_vm6 = vmor %vm328_vm5, %vm329_vm4 }
 0x1ba   :  { %v321_v32 = vsel %vm320_vm3, %v1752_v61, %v317_v31  ;;  %v324_v33 = vmul.f32 %v1754_v30, %v323_v2 }
 0x1bb   :  { %v2141_v34 = vmul.f32 %v321_v32, %v2027_v7 }
 0x1bc   :  { %v325_v35 = vmul.f32 0.5, %v324_v33  ;;  %v115_v33 = vlaneseq }
 0x1bd   :  { %1608 = vmatmul.msk.f32.gmra.mxu1 %vm101_vm1, %v2141_v34  ;;  %1618 = vmatmul.msk.f32.gmra.mxu2 %vm101_vm1, %v2141_v34 }
 0x1be   :  { %v326_v36 = vsub.f32 1.5, %v325_v35  ;;  %1628 = vmatmul.msk.f32.gmra.mxu3 %vm101_vm1, %v2141_v34  ;;  %1662 = vmatmul.msk.f32.vlgmr.msrb.gmra.mxu0 %vm101_vm1, %v2078_v46 }
 0x1c0   :  { %v327_v37 = vmul.f32 %v1754_v30, %v326_v36  ;;  %v116_v36 = vand.u32 127, %v115_v33 }
 0x1c2   :  { %v331_v7 = vsel %vm330_vm6, %v1754_v30, %v327_v37  ;;  %vm142_vm8 = vcmp.lt.s32.totalorder %v116_v36, 17  ;;  %v1846_v37 = vmov -1e+30   ;;  %vm167_vm9 = vcmp.ge.s32.totalorder %v116_v36, 24 }
 0x1c3   :  { %v2152_v38 = vmul.f32 %v331_v7, %v2033_v12  ;;  %v2215_v7 = vsel %vm142_vm8, 0.0, %v1846_v37  ;;  %vm174_vm10 = vcmp.lt.s32.totalorder %v116_v36, 41 }
 0x1c4   :  { %vm178_vm11 = vmand %vm167_vm9, %vm174_vm10 }
 0x1c5   :  { %1609 = vmatmul.msk.f32.gmra.mxu1 %vm101_vm1, %v2152_v38  ;;  %1619 = vmatmul.msk.f32.gmra.mxu2 %vm101_vm1, %v2152_v38 }
 0x1c6   :  { %1629 = vmatmul.msk.f32.gmra.mxu3 %vm101_vm1, %v2152_v38  ;;  %1663 = vmatmul.msk.f32.gmra.mxu0 %vm101_vm1, %v2098_v0 }
 0x1ce   :  { %1652 = vmatmul.msk.f32.vlgmr.msrb.gmra.mxu3 %vm101_vm1, %v2078_v46  ;;  %1664 = vmatmul.msk.f32.gmra.mxu0 %vm101_vm1, %v2117_v16 }
 0x1d6   :  { %1653 = vmatmul.msk.f32.gmra.mxu3 %vm101_vm1, %v2098_v0  ;;  %1665 = vmatmul.msk.f32.gmra.mxu0 %vm101_vm1, %v2130_v27 }
 0x1de   :  { %1654 = vmatmul.msk.f32.gmra.mxu3 %vm101_vm1, %v2117_v16  ;;  %1666 = vmatmul.msk.f32.gmra.mxu0 %vm101_vm1, %v2141_v34 }
 0x1e6   :  { %1655 = vmatmul.msk.f32.gmra.mxu3 %vm101_vm1, %v2130_v27  ;;  %1667 = vmatmul.msk.f32.gmra.mxu0 %vm101_vm1, %v2152_v38 }
 0x1ee   :  { %1656 = vmatmul.msk.f32.gmra.mxu3 %vm101_vm1, %v2141_v34 }
 0x1f6   :  { %1657 = vmatmul.msk.f32.gmra.mxu3 %vm101_vm1, %v2152_v38 }
 0x21a   :  { %v379_v12 = vpop.f32.mrf.mxu0 }
 0x21b   :  { %v380_v17 = vadd.f32 %v1730_v14, %v379_v12 }
 0x220   :  { %v421_v39 = vpop.f32.mrf.mxu2 }
 0x221   :  { %v422_v15 = vadd.f32 %v1731_v55, %v421_v39 }
 0x222   :  { %v382_v40 = vpop.f32.mrf.mxu0 }
 0x223   :  { %v383_v21 = vadd.f32 %v1730_v14, %v382_v40 }
 0x228   :  { %v424_v41 = vpop.f32.mrf.mxu2 }
 0x229   :  { %v466_v42 = vpop.f32.mrf.mxu3  ;;  %v425_v11 = vadd.f32 %v1731_v55, %v424_v41 }
 0x22a   :  { %v385_v43 = vpop.f32.mrf.mxu0  ;;  %v467_v6 = vadd.f32 %v1732_v57, %v466_v42 }
 0x22b   :  { %v386_v23 = vadd.f32 %v1730_v14, %v385_v43 }
 0x230   :  { %v427_v44 = vpop.f32.mrf.mxu2 }
 0x231   :  { %v469_v45 = vpop.f32.mrf.mxu3  ;;  %v428_v10 = vadd.f32 %v1731_v55, %v427_v44  ;;  %v2221_v44 = vsel %vm178_vm11, 0.0, %v1846_v37 }
 0x232   :  { %v470_v5 = vadd.f32 %v1732_v57, %v469_v45  ;;  %v388_v25 = vpop.f32.mrf.mxu1 }
 0x233   :  { %v463_v47 = vpop.f32.mrf.mxu0  ;;  %v389_v28 = vadd.f32 %v1730_v14, %v388_v25 }
 0x234   :  { %v464_v9 = vadd.f32 %v1732_v57, %v463_v47 }
 0x238   :  { %v430_v49 = vpop.f32.mrf.mxu2 }
 0x239   :  { %v472_v50 = vpop.f32.mrf.mxu3  ;;  %v431_v56 = vadd.f32 %v1731_v55, %v430_v49 }
 0x23a   :  { %v473_v4 = vadd.f32 %v1732_v57, %v472_v50  ;;  %v391_v30 = vpop.f32.mrf.mxu1 }
 0x23b   :  { %v2182_v52 = vpop.f32.mrf.mxu0  ;;  %v392_v31 = vadd.f32 %v1730_v14, %v391_v30 }
 0x23c   :  { %v741_v29 = vadd.f32 %v1733_v18, %v2182_v52 }
 0x240   :  { %v433_v53 = vpop.f32.mrf.mxu2 }
 0x241   :  { %v475_v51 = vpop.f32.mrf.mxu3  ;;  %v434_v3 = vadd.f32 %v1731_v55, %v433_v53 }
 0x242   :  { %v476_v1 = vadd.f32 %v1732_v57, %v475_v51  ;;  %v394_v2 = vpop.f32.mrf.mxu1 }
 0x243   :  { %v743_v54 = vpop.f32.mrf.mxu0  ;;  %v395_v32 = vadd.f32 %v1730_v14, %v394_v2 }
 0x244   :  { %v744_v26 = vadd.f32 %v1733_v18, %v743_v54 }
 0x248   :  { %v436_v58 = vpop.f32.mrf.mxu2 }
 0x249   :  { %v437_v59 = vadd.f32 %v1731_v55, %v436_v58  ;;  %v478_v60 = vpop.f32.mrf.mxu3 }
 0x24a   :  { %v479_v62 = vadd.f32 %v1732_v57, %v478_v60 }
 0x24b   :  { %v746_v63 = vpop.f32.mrf.mxu0  ;;  %1630 = vmatpush.xpose.msk.msrb.mxu1 %vm481_vm7, %v437_v59 }
 0x24c   :  { %1722 = vmatpush.msrb.mxu2 %v479_v62  ;;  %v747_v24 = vadd.f32 %v1733_v18, %v746_v63 }
 0x24e   :  { %1723 = vmatpush.msrb.mxu2 %v476_v1 }
 0x24f   :  { %1631 = vmatpush.xpose.msk.msrb.mxu1 %vm481_vm7, %v434_v3 }
 0x250   :  { %1724 = vmatpush.msrb.mxu2 %v473_v4 }
 0x252   :  { %1725 = vmatpush.msrb.mxu2 %v470_v5 }
 0x253   :  { %v749_v8 = vpop.f32.mrf.mxu0  ;;  %1632 = vmatpush.xpose.msk.msrb.mxu1 %vm481_vm7, %v431_v56 }
 0x254   :  { %1726 = vmatpush.msrb.mxu2 %v467_v6  ;;  %v750_v22 = vadd.f32 %v1733_v18, %v749_v8 }
 0x256   :  { %1727 = vmatpush.msrb.mxu2 %v464_v9 }
 0x257   :  { %1633 = vmatpush.xpose.msk.msrb.mxu1 %vm481_vm7, %v428_v10 }
 0x25b   :  { %v752_v13 = vpop.f32.mrf.mxu0  ;;  %1634 = vmatpush.xpose.msk.msrb.mxu1 %vm481_vm7, %v425_v11 }
 0x25c   :  { %v753_v61 = vadd.f32 %v1733_v18, %v752_v13 }
 0x25f   :  { %1635 = vmatpush.xpose.msk.msrb.mxu1 %vm481_vm7, %v422_v15 }
 0x262   :  { %1636 = vmatmul.msk.f32.vlgmr.msrb.gmra.mxu1 %vm481_vm7, %v380_v17 }
 0x263   :  { %647 = vmatpush.msra.mxu1 %v479_v62  ;;  %v755_v19 = vpop.f32.mrf.mxu0 }
 0x264   :  { %v756_v20 = vadd.f32 %v1733_v18, %v755_v19 }
 0x265   :  { %648 = vmatpush.msra.mxu1 %v476_v1 }
 0x266   :  { %1678 = vmatpush.xpose.msk.msra.mxu2 %vm481_vm7, %v756_v20 }
 0x267   :  { %649 = vmatpush.msra.mxu1 %v473_v4 }
 0x269   :  { %650 = vmatpush.msra.mxu1 %v470_v5 }
 0x26a   :  { %1679 = vmatpush.xpose.msk.msra.mxu2 %vm481_vm7, %v753_v61  ;;  %1637 = vmatmul.msk.f32.gmra.mxu1 %vm481_vm7, %v383_v21 }
 0x26b   :  { %651 = vmatpush.msra.mxu1 %v467_v6 }
 0x26d   :  { %652 = vmatpush.msra.mxu1 %v464_v9 }
 0x26e   :  { %1680 = vmatpush.xpose.msk.msra.mxu2 %vm481_vm7, %v750_v22 }
 0x272   :  { %1681 = vmatpush.xpose.msk.msra.mxu2 %vm481_vm7, %v747_v24  ;;  %1638 = vmatmul.msk.f32.gmra.mxu1 %vm481_vm7, %v386_v23 }
 0x276   :  { %1682 = vmatpush.xpose.msk.msra.mxu2 %vm481_vm7, %v744_v26 }
 0x27a   :  { %1683 = vmatpush.xpose.msk.msra.mxu2 %vm481_vm7, %v741_v29  ;;  %1639 = vmatmul.msk.f32.gmra.mxu1 %vm481_vm7, %v389_v28 }
 0x282   :  { %1640 = vmatmul.msk.f32.gmra.mxu1 %vm481_vm7, %v392_v31 }
 0x28a   :  { %1641 = vmatmul.msk.f32.gmra.mxu1 %vm481_vm7, %v395_v32 }
 0x2df   :  { %v535_v35 = vpop.f32.mrf.mxu1 }
 0x2e0   :  { %v536_v15 = vadd.f32 %v535_v35, %v2215_v7 }
 0x2e2   :  { %v553_v61 = vsel %vm47_vm0, %v536_v15, -inf }
 0x2e7   :  { %v538_v12 = vpop.f32.mrf.mxu1 }
 0x2e8   :  { %v539_v39 = vadd.f32 %v538_v12, %v2215_v7 }
 0x2ea   :  { %v556_v40 = vsel %vm47_vm0, %v539_v39, -inf }
 0x2eb   :  { %557 = vmax.xlane.f32.xlu0 %v556_v40 }
 0x2ef   :  { %v541_v41 = vpop.f32.mrf.mxu1 }
 0x2f0   :  { %v542_v42 = vadd.f32 %v541_v41, %v2215_v7 }
 0x2f2   :  { %v559_v43 = vsel %vm47_vm0, %v542_v42, -inf }
 0x2f3   :  { %560 = vmax.xlane.f32.xlu1 %v559_v43 }
 0x2f7   :  { %v544_v45 = vpop.f32.mrf.mxu1 }
 0x2f8   :  { %v545_v47 = vadd.f32 %v544_v45, %v2221_v44 }
 0x2fa   :  { %v562_v49 = vsel %vm47_vm0, %v545_v47, -inf }
 0x2fb   :  { %563 = vmax.xlane.f32.xlu2 %v562_v49  ;;  %v1734_v49 = vld [vmem:[%s2691_s7 + $0x1] ss:$0 sm:$0xff] }
 0x2ff   :  { %v547_v50 = vpop.f32.mrf.mxu1 }
 0x300   :  { %v548_v52 = vadd.f32 %v547_v50, %v2221_v44 }
 0x302   :  { %v565_v53 = vsel %vm47_vm0, %v548_v52, -inf }
 0x303   :  { %566 = vmax.xlane.f32.xlu0 %v565_v53 }
 0x307   :  { %v550_v51 = vpop.f32.mrf.mxu1 }
 0x308   :  { %v551_v54 = vadd.f32 %v550_v51, %v2221_v44 }
 0x30a   :  { %v568_v55 = vsel %vm47_vm0, %v551_v54, -inf }
 0x30b   :  { %569 = vmax.xlane.f32.xlu1 %v568_v55 }
 0x35e   :  { %v558_v57 = vpop.xlane.xlu0 %557 }
 0x35f   :  { %v572_v58 = vsub.f32 %v539_v39, %v558_v57 }
 0x361   :  { %v579_v59 = vmul.f32 1.442695, %v572_v58 }
 0x363   :  { %1755 = vpow2.f32 %v579_v59 }
 0x366   :  { %v561_v60 = vpop.xlane.xlu1 %560 }
 0x367   :  { %v573_v62 = vsub.f32 %v542_v42, %v561_v60  ;;  %v698_v42 = vpop.f32.mrf.mxu3 }
 0x369   :  { %v1756_v63 = vpop.eup %1755  ;;  %v581_v1 = vmul.f32 1.442695, %v573_v62 }
 0x36a   :  { %v592_v3 = vsel %vm47_vm0, %v1756_v63, 0.0 }
 0x36b   :  { %1757 = vpow2.f32 %v581_v1  ;;  %593 = vadd.xlane.f32.xlu2 %v592_v3  ;;  %v1670_v1 = vld [vmem:[%s2690_s3 + $0xb0] sm:$0xff]  ;;  %v1669_v3 = vld [vmem:[%s2690_s3 + $0xa8] sm:$0xff] }
 0x36e   :  { %v564_v4 = vpop.xlane.xlu2 %563 }
 0x36f   :  { %v574_v5 = vsub.f32 %v545_v47, %v564_v4  ;;  %v701_v50 = vpop.f32.mrf.mxu3  ;;  %v1668_v4 = vld [vmem:[%s2690_s3 + $0xa0] sm:$0xff] }
 0x370   :  { %v702_v51 = vadd.f32 %v1734_v49, %v701_v50 }
 0x371   :  { %v1758_v56 = vpop.eup %1757  ;;  %v583_v6 = vmul.f32 1.442695, %v574_v5 }
 0x372   :  { %v595_v8 = vsel %vm47_vm0, %v1758_v56, 0.0 }
 0x373   :  { %1759 = vpow2.f32 %v583_v6  ;;  %596 = vadd.xlane.f32.xlu0 %v595_v8 }
 0x376   :  { %v567_v9 = vpop.xlane.xlu0 %566 }
 0x377   :  { %v575_v10 = vsub.f32 %v548_v52, %v567_v9  ;;  %v699_v52 = vadd.f32 %v1734_v49, %v698_v42  ;;  %v704_v53 = vpop.f32.mrf.mxu3 }
 0x379   :  { %v1760_v11 = vpop.eup %1759  ;;  %v585_v13 = vmul.f32 1.442695, %v575_v10 }
 0x37a   :  { %v598_v14 = vsel %vm47_vm0, %v1760_v11, 0.0 }
 0x37b   :  { %1761 = vpow2.f32 %v585_v13  ;;  %599 = vadd.xlane.f32.xlu1 %v598_v14 }
 0x37e   :  { %v570_v17 = vpop.xlane.xlu1 %569 }
 0x37f   :  { %v576_v18 = vsub.f32 %v551_v54, %v570_v17  ;;  %v705_v54 = vadd.f32 %v1734_v49, %v704_v53  ;;  %v707_v55 = vpop.f32.mrf.mxu3 }
 0x380   :  { %v708_v57 = vadd.f32 %v1734_v49, %v707_v55 }
 0x381   :  { %v1762_v19 = vpop.eup %1761  ;;  %v587_v20 = vmul.f32 1.442695, %v576_v18 }
 0x382   :  { %v601_v21 = vsel %vm47_vm0, %v1762_v19, 0.0 }
 0x383   :  { %1763 = vpow2.f32 %v587_v20  ;;  %602 = vadd.xlane.f32.xlu2 %v601_v21  ;;  %554 = vmax.xlane.f32.xlu1 %v553_v61 }
 0x387   :  { %v710_v58 = vpop.f32.mrf.mxu3 }
 0x388   :  { %v711_v59 = vadd.f32 %v1734_v49, %v710_v58 }
 0x389   :  { %v1764_v22 = vpop.eup %1763 }
 0x38a   :  { %v604_v23 = vsel %vm47_vm0, %v1764_v22, 0.0 }
 0x38b   :  { %605 = vadd.xlane.f32.xlu0 %v604_v23 }
 0x38f   :  { %v713_v60 = vpop.f32.mrf.mxu3 }
 0x390   :  { %v714_v62 = vadd.f32 %v1734_v49, %v713_v60 }
 0x3de   :  { %v594_v24 = vpop.xlane.xlu2 %593 }
 0x3df   :  { %1765 = vrcp.f32 %v594_v24 }
 0x3e5   :  { %v1766_v25 = vpop.eup %1765 }
 0x3e6   :  { %v597_v26 = vpop.xlane.xlu0 %596  ;;  %v614_v28 = vmul.f32 %v1766_v25, %v1756_v63  ;;  %v1671_v63 = vld [vmem:[%s2690_s3 + $0xb8] sm:$0xff] }
 0x3e7   :  { %1767 = vrcp.f32 %v597_v26  ;;  %777 = vmatpush.msrb.mxu1 %v1671_v63 }
 0x3e8   :  { %1643 = vmatmul.msk.f32.vlgmr.msrb.gmra.mxu2 %vm47_vm0, %v614_v28  ;;  %v672_v28 = vld [vmem:[%s2692_s4] sm:$0xff] }
 0x3e9   :  { %778 = vmatpush.msrb.mxu1 %v1670_v1 }
 0x3eb   :  { %779 = vmatpush.msrb.mxu1 %v1669_v3 }
 0x3ed   :  { %v1768_v29 = vpop.eup %1767  ;;  %780 = vmatpush.msrb.mxu1 %v1668_v4 }
 0x3ee   :  { %v600_v30 = vpop.xlane.xlu1 %599  ;;  %v615_v31 = vmul.f32 %v1768_v29, %v1758_v56 }
 0x3ef   :  { %1769 = vrcp.f32 %v600_v30 }
 0x3f0   :  { %1644 = vmatmul.msk.f32.gmra.mxu2 %vm47_vm0, %v615_v31 }
 0x3f5   :  { %v1770_v2 = vpop.eup %1769 }
 0x3f6   :  { %v555_v32 = vpop.xlane.xlu1 %554  ;;  %v603_v33 = vpop.xlane.xlu2 %602  ;;  %v616_v35 = vmul.f32 %v1770_v2, %v1760_v11 }
 0x3f7   :  { %v571_v36 = vsub.f32 %v536_v15, %v555_v32  ;;  %1771 = vrcp.f32 %v603_v33 }
 0x3f8   :  { %1645 = vmatmul.msk.f32.gmra.mxu2 %vm47_vm0, %v616_v35 }
 0x3f9   :  { %v577_v37 = vmul.f32 1.442695, %v571_v36 }
 0x3fb   :  { %1773 = vpow2.f32 %v577_v37 }
 0x3fd   :  { %v1772_v12 = vpop.eup %1771 }
 0x3fe   :  { %v606_v39 = vpop.xlane.xlu0 %605  ;;  %v617_v40 = vmul.f32 %v1772_v12, %v1762_v19 }
 0x3ff   :  { %1775 = vrcp.f32 %v606_v39 }
 0x400   :  { %1646 = vmatmul.msk.f32.gmra.mxu2 %vm47_vm0, %v617_v40 }
 0x401   :  { %v1774_v41 = vpop.eup %1773 }
 0x402   :  { %v589_v43 = vsel %vm47_vm0, %v1774_v41, 0.0 }
 0x403   :  { %590 = vadd.xlane.f32.xlu2 %v589_v43 }
 0x405   :  { %v1776_v45 = vpop.eup %1775 }
 0x406   :  { %v618_v47 = vmul.f32 %v1776_v45, %v1764_v22 }
 0x408   :  { %1647 = vmatmul.msk.f32.gmra.mxu2 %vm47_vm0, %v618_v47 }
 0x410   :  { %1684 = vmatmul.msk.f32.vlgmr.msra.gmra.mxu2 %vm481_vm7, %v699_v52 }
 0x418   :  { %1685 = vmatmul.msk.f32.gmra.mxu2 %vm481_vm7, %v702_v51 }
 0x420   :  { %1686 = vmatmul.msk.f32.gmra.mxu2 %vm481_vm7, %v705_v54 }
 0x428   :  { %1687 = vmatmul.msk.f32.gmra.mxu2 %vm481_vm7, %v708_v57  ;;  %v1735_v57 = vld [vmem:[%s2691_s7 + $0x5] ss:$0 sm:$0xff] }
 0x430   :  { %1688 = vmatmul.msk.f32.gmra.mxu2 %vm481_vm7, %v711_v59 }
 0x438   :  { %1689 = vmatmul.msk.f32.gmra.mxu2 %vm481_vm7, %v714_v62 }
 0x46b   :  { %v657_v5 = vpop.f32.mrf.mxu2 }
 0x473   :  { %v660_v56 = vpop.f32.mrf.mxu2 }
 0x476   :  { %v591_v6 = vpop.xlane.xlu2 %590 }
 0x477   :  { %1777 = vrcp.f32 %v591_v6 }
 0x47b   :  { %v663_v8 = vpop.f32.mrf.mxu2 }
 0x47d   :  { %v1778_v9 = vpop.eup %1777 }
 0x47e   :  { %v613_v10 = vmul.f32 %v1778_v9, %v1774_v41 }
 0x480   :  { %1642 = vmatmul.msk.f32.vlgmr.msra.gmra.mxu1 %vm47_vm0, %v613_v10 }
 0x483   :  { %v666_v11 = vpop.f32.mrf.mxu2 }
 0x488   :  { %1672 = vmatmul.msk.f32.vlgmr.msrb.gmra.mxu1 %vm101_vm1, %v2078_v46  ;;  %v673_v46 = vld [vmem:[%s2692_s4 + $0x8] sm:$0xff] }
 0x489   :  { %1077 = vmatpush.msra.mxu1 %v673_v46 }
 0x48b   :  { %v2266_v13 = vpop.f32.mrf.mxu2  ;;  %1078 = vmatpush.msra.mxu1 %v672_v28 }
 0x490   :  { %1673 = vmatmul.msk.f32.gmra.mxu1 %vm101_vm1, %v2098_v0 }
 0x493   :  { %v853_v14 = vpop.f32.mrf.mxu2 }
 0x494   :  { %v854_v15 = vadd.f32 %v853_v14, %v2215_v7 }
 0x496   :  { %v871_v17 = vsel %vm47_vm0, %v854_v15, -inf }
 0x497   :  { %872 = vmax.xlane.f32.xlu0 %v871_v17 }
 0x498   :  { %1674 = vmatmul.msk.f32.gmra.mxu1 %vm101_vm1, %v2117_v16 }
 0x49b   :  { %v856_v18 = vpop.f32.mrf.mxu2 }
 0x49c   :  { %v857_v19 = vadd.f32 %v856_v18, %v2215_v7 }
 0x49e   :  { %v874_v20 = vsel %vm47_vm0, %v857_v19, -inf }
 0x49f   :  { %875 = vmax.xlane.f32.xlu1 %v874_v20 }
 0x4a0   :  { %1675 = vmatmul.msk.f32.gmra.mxu1 %vm101_vm1, %v2130_v27 }
 0x4a3   :  { %v859_v0 = vpop.f32.mrf.mxu2 }
 0x4a4   :  { %v860_v21 = vadd.f32 %v859_v0, %v2215_v7 }
 0x4a6   :  { %v877_v61 = vsel %vm47_vm0, %v860_v21, -inf }
 0x4a7   :  { %878 = vmax.xlane.f32.xlu2 %v877_v61  ;;  %v990_v61 = vld [vmem:[%s2692_s4 + $0x10] sm:$0xff] }
 0x4a8   :  { %1676 = vmatmul.msk.f32.gmra.mxu1 %vm101_vm1, %v2141_v34 }
 0x4ab   :  { %v862_v16 = vpop.f32.mrf.mxu2 }
 0x4ac   :  { %v863_v22 = vadd.f32 %v862_v16, %v2221_v44 }
 0x4ae   :  { %v880_v23 = vsel %vm47_vm0, %v863_v22, -inf }
 0x4af   :  { %881 = vmax.xlane.f32.xlu0 %v880_v23 }
 0x4b0   :  { %1677 = vmatmul.msk.f32.gmra.mxu1 %vm101_vm1, %v2152_v38 }
 0x4b3   :  { %v865_v27 = vpop.f32.mrf.mxu2 }
 0x4b4   :  { %v866_v24 = vadd.f32 %v865_v27, %v2221_v44 }
 0x4b6   :  { %v883_v7 = vsel %vm47_vm0, %v866_v24, -inf }
 0x4b7   :  { %884 = vmax.xlane.f32.xlu1 %v883_v7 }
 0x4bb   :  { %v868_v25 = vpop.f32.mrf.mxu2 }
 0x4bc   :  { %v869_v26 = vadd.f32 %v868_v25, %v2221_v44 }
 0x4be   :  { %v886_v34 = vsel %vm47_vm0, %v869_v26, -inf }
 0x4bf   :  { %887 = vmax.xlane.f32.xlu2 %v886_v34 }
 0x4fd   :  { %v654_v29 = vpop.f32.mrf.mxu1 }
 0x4fe   :  { %1702 = vmatmul.msk.f32.vlgmr.msra.gmra.mxu1 %vm481_vm7, %v654_v29 }
 0x505   :  { %v782_v38 = vpop.f32.mrf.mxu1 }
 0x506   :  { %1703 = vmatmul.msk.f32.gmra.mxu1 %vm481_vm7, %v657_v5 }
 0x50a   :  { %v873_v30 = vpop.xlane.xlu0 %872 }
 0x50b   :  { %v889_v31 = vsub.f32 %v854_v15, %v873_v30 }
 0x50d   :  { %v895_v2 = vmul.f32 1.442695, %v889_v31  ;;  %v785_v32 = vpop.f32.mrf.mxu1 }
 0x50e   :  { %1704 = vmatmul.msk.f32.gmra.mxu1 %vm481_vm7, %v660_v56  ;;  %v786_v9 = vadd.f32 %v1735_v57, %v785_v32 }
 0x50f   :  { %1779 = vpow2.f32 %v895_v2 }
 0x512   :  { %v876_v44 = vpop.xlane.xlu1 %875 }
 0x513   :  { %v890_v33 = vsub.f32 %v857_v19, %v876_v44 }
 0x515   :  { %v1780_v35 = vpop.eup %1779  ;;  %v897_v36 = vmul.f32 1.442695, %v890_v33  ;;  %v788_v37 = vpop.f32.mrf.mxu1 }
 0x516   :  { %1705 = vmatmul.msk.f32.gmra.mxu1 %vm481_vm7, %v663_v8  ;;  %v907_v12 = vsel %vm47_vm0, %v1780_v35, 0.0  ;;  %v789_v56 = vadd.f32 %v1735_v57, %v788_v37 }
 0x517   :  { %1781 = vpow2.f32 %v897_v36  ;;  %908 = vadd.xlane.f32.xlu0 %v907_v12  ;;  %v1736_v12 = vld [vmem:[%s2691_s7 + $0x6] ss:$0 sm:$0xff] }
 0x51a   :  { %v879_v39 = vpop.xlane.xlu2 %878 }
 0x51b   :  { %v891_v40 = vsub.f32 %v860_v21, %v879_v39  ;;  %v991_v21 = vld [vmem:[%s2692_s4 + $0x18] sm:$0xff]  ;;  %v1839_v39 = vld [vmem:[%s2689_s8] sm:$0xff] }
 0x51c   :  { %1024 = vmatpush.msra.mxu0 %v991_v21 }
 0x51d   :  { %v1782_v41 = vpop.eup %1781  ;;  %v899_v42 = vmul.f32 1.442695, %v891_v40  ;;  %v791_v43 = vpop.f32.mrf.mxu1 }
 0x51e   :  { %1706 = vmatmul.msk.f32.gmra.mxu1 %vm481_vm7, %v666_v11  ;;  %v910_v45 = vsel %vm47_vm0, %v1782_v41, 0.0  ;;  %v792_v3 = vadd.f32 %v1735_v57, %v791_v43  ;;  %v783_v11 = vadd.f32 %v1735_v57, %v782_v38  ;;  %1025 = vmatpush.msra.mxu0 %v990_v61 }
 0x51f   :  { %1783 = vpow2.f32 %v899_v42  ;;  %911 = vadd.xlane.f32.xlu1 %v910_v45 }
 0x522   :  { %v882_v47 = vpop.xlane.xlu0 %881 }
 0x523   :  { %v892_v49 = vsub.f32 %v863_v22, %v882_v47  ;;  %v1840_v47 = vld [vmem:[%s2689_s8 + $0x8] sm:$0xff] }
 0x525   :  { %v1784_v50 = vpop.eup %1783  ;;  %v901_v52 = vmul.f32 1.442695, %v892_v49  ;;  %v794_v53 = vpop.f32.mrf.mxu1 }
 0x526   :  { %1707 = vmatmul.msk.f32.gmra.mxu1 %vm481_vm7, %v2266_v13  ;;  %v913_v51 = vsel %vm47_vm0, %v1784_v50, 0.0  ;;  %v795_v1 = vadd.f32 %v1735_v57, %v794_v53 }
 0x527   :  { %1785 = vpow2.f32 %v901_v52  ;;  %914 = vadd.xlane.f32.xlu2 %v913_v51 }
 0x52a   :  { %v885_v54 = vpop.xlane.xlu1 %884 }
 0x52b   :  { %v893_v55 = vsub.f32 %v866_v24, %v885_v54 }
 0x52d   :  { %v1786_v58 = vpop.eup %1785  ;;  %v903_v59 = vmul.f32 1.442695, %v893_v55  ;;  %v797_v60 = vpop.f32.mrf.mxu1  ;;  %v1841_v55 = vld [vmem:[%s2689_s8 + $0x10] sm:$0xff] }
 0x52e   :  { %v798_v62 = vadd.f32 %v1735_v57, %v797_v60  ;;  %v916_v63 = vsel %vm47_vm0, %v1786_v58, 0.0 }
 0x52f   :  { %1787 = vpow2.f32 %v903_v59  ;;  %917 = vadd.xlane.f32.xlu0 %v916_v63 }
 0x530   :  { %965 = vmatpush.msra.mxu3 %v798_v62 }
 0x532   :  { %966 = vmatpush.msra.mxu3 %v795_v1  ;;  %v888_v4 = vpop.xlane.xlu2 %887 }
 0x533   :  { %v894_v5 = vsub.f32 %v869_v26, %v888_v4 }
 0x534   :  { %967 = vmatpush.msra.mxu3 %v792_v3  ;;  %v1842_v3 = vld [vmem:[%s2689_s8 + $0x18] sm:$0xff] }
 0x535   :  { %v1788_v6 = vpop.eup %1787  ;;  %v905_v8 = vmul.f32 1.442695, %v894_v5 }
 0x536   :  { %968 = vmatpush.msra.mxu3 %v789_v56  ;;  %v919_v10 = vsel %vm47_vm0, %v1788_v6, 0.0 }
 0x537   :  { %1789 = vpow2.f32 %v905_v8  ;;  %920 = vadd.xlane.f32.xlu1 %v919_v10 }
 0x538   :  { %969 = vmatpush.msra.mxu3 %v786_v9 }
 0x53a   :  { %970 = vmatpush.msra.mxu3 %v783_v11  ;;  %v1843_v11 = vld [vmem:[%s2689_s8 + $0x20] sm:$0xff] }
 0x53d   :  { %v1790_v13 = vpop.eup %1789 }
 0x53e   :  { %v922_v14 = vsel %vm47_vm0, %v1790_v13, 0.0 }
 0x53f   :  { %923 = vadd.xlane.f32.xlu2 %v922_v14 }
 0x57b   :  { %v1080_v33 = vpop.f32.mrf.mxu1 }
 0x58a   :  { %v909_v15 = vpop.xlane.xlu0 %908 }
 0x58b   :  { %1791 = vrcp.f32 %v909_v15 }
 0x591   :  { %v1792_v17 = vpop.eup %1791 }
 0x592   :  { %v931_v18 = vmul.f32 %v1792_v17, %v1780_v35  ;;  %v912_v19 = vpop.xlane.xlu1 %911  ;;  %v1083_v35 = vpop.f32.mrf.mxu1 }
 0x593   :  { %1793 = vrcp.f32 %v912_v19 }
 0x594   :  { %1690 = vmatmul.msk.f32.vlgmr.msra.gmra.mxu3 %vm47_vm0, %v931_v18 }
 0x599   :  { %v1794_v20 = vpop.eup %1793 }
 0x59a   :  { %v915_v46 = vpop.xlane.xlu2 %914  ;;  %v932_v0 = vmul.f32 %v1794_v20, %v1782_v41  ;;  %v1086_v45 = vpop.f32.mrf.mxu1 }
 0x59b   :  { %1795 = vrcp.f32 %v915_v46  ;;  %v1844_v46 = vld [vmem:[%s2689_s8 + $0x28] sm:$0xff] }
 0x59c   :  { %1691 = vmatmul.msk.f32.gmra.mxu3 %vm47_vm0, %v932_v0 }
 0x5a1   :  { %v1796_v16 = vpop.eup %1795 }
 0x5a2   :  { %v918_v22 = vpop.xlane.xlu0 %917  ;;  %v933_v23 = vmul.f32 %v1796_v16, %v1784_v50 }
 0x5a3   :  { %1797 = vrcp.f32 %v918_v22 }
 0x5a4   :  { %1692 = vmatmul.msk.f32.gmra.mxu3 %vm47_vm0, %v933_v23 }
 0x5a9   :  { %v1798_v27 = vpop.eup %1797 }
 0x5aa   :  { %v921_v24 = vpop.xlane.xlu1 %920  ;;  %v934_v7 = vmul.f32 %v1798_v27, %v1786_v58  ;;  %v1089_v58 = vpop.f32.mrf.mxu1 }
 0x5ab   :  { %1799 = vrcp.f32 %v921_v24 }
 0x5ac   :  { %1693 = vmatmul.msk.f32.gmra.mxu3 %vm47_vm0, %v934_v7 }
 0x5b1   :  { %v1800_v25 = vpop.eup %1799 }
 0x5b2   :  { %v924_v26 = vpop.xlane.xlu2 %923  ;;  %v935_v34 = vmul.f32 %v1800_v25, %v1788_v6  ;;  %v1092_v56 = vpop.f32.mrf.mxu1 }
 0x5b3   :  { %1801 = vrcp.f32 %v924_v26 }
 0x5b4   :  { %1694 = vmatmul.msk.f32.gmra.mxu3 %vm47_vm0, %v935_v34 }
 0x5b9   :  { %v1802_v28 = vpop.eup %1801 }
 0x5ba   :  { %v936_v29 = vmul.f32 %v1802_v28, %v1790_v13  ;;  %v1095_v18 = vpop.f32.mrf.mxu1 }
 0x5bc   :  { %1695 = vmatmul.msk.f32.gmra.mxu3 %vm47_vm0, %v936_v29 }
 0x617   :  { %v972_v38 = vpop.f32.mrf.mxu3 }
 0x618   :  { %1696 = vmatmul.msk.f32.vlgmr.msra.gmra.mxu0 %vm481_vm7, %v972_v38 }
 0x61f   :  { %v975_v30 = vpop.f32.mrf.mxu3 }
 0x620   :  { %1697 = vmatmul.msk.f32.gmra.mxu0 %vm481_vm7, %v975_v30 }
 0x627   :  { %v978_v31 = vpop.f32.mrf.mxu3 }
 0x628   :  { %1698 = vmatmul.msk.f32.gmra.mxu0 %vm481_vm7, %v978_v31 }
 0x62f   :  { %v981_v2 = vpop.f32.mrf.mxu3 }
 0x630   :  { %1699 = vmatmul.msk.f32.gmra.mxu0 %vm481_vm7, %v981_v2  ;;  %v1259_v2 = vld [vmem:[%s2693_s5 + $0x18] sm:$0xff] }
 0x631   :  { %1292 = vmatpush.msrb.mxu2 %v1259_v2 }
 0x637   :  { %v984_v32 = vpop.f32.mrf.mxu3 }
 0x638   :  { %1700 = vmatmul.msk.f32.gmra.mxu0 %vm481_vm7, %v984_v32  ;;  %v1258_v32 = vld [vmem:[%s2693_s5 + $0x10] sm:$0xff] }
 0x639   :  { %1293 = vmatpush.msrb.mxu2 %v1258_v32  ;;  %v1384_v32 = vld [vmem:[%s2694_s6 + $0x78] sm:$0xff] }
 0x63a   :  { %1387 = vmatpush.msrb.mxu3 %v1384_v32 }
 0x63f   :  { %v987_v44 = vpop.f32.mrf.mxu3 }
 0x640   :  { %1701 = vmatmul.msk.f32.gmra.mxu0 %vm481_vm7, %v987_v44 }
 0x695   :  { %v1027_v36 = vpop.f32.mrf.mxu0 }
 0x696   :  { %v1081_v37 = vadd.f32 %v1080_v33, %v1027_v36 }
 0x698   :  { %v1098_v40 = vadd.f32 %v1839_v39, %v1081_v37 }
 0x69a   :  { %v1106_v41 = vadd.f32 %v1736_v12, %v1098_v40 }
 0x69c   :  { %1112 = vst.msk [vmem:[%s2689_s8] sm:$0xff] %vm101_vm1, %v1106_v41 }
 0x69d   :  { %v1030_v42 = vpop.f32.mrf.mxu0 }
 0x69e   :  { %v1084_v43 = vadd.f32 %v1083_v35, %v1030_v42 }
 0x6a0   :  { %v1099_v49 = vadd.f32 %v1840_v47, %v1084_v43 }
 0x6a2   :  { %v1107_v50 = vadd.f32 %v1736_v12, %v1099_v49 }
 0x6a3   :  { %v2346_v52 = vld [vmem:[%s2689_s8] sm:$0xff] }
 0x6a4   :  { %1113 = vst.msk [vmem:[%s2689_s8 + $0x8] sm:$0xff] %vm101_vm1, %v1107_v50  ;;  %v1124_v53 = vsel %vm101_vm1, %v2346_v52, 0.0 }
 0x6a5   :  { %1125 = vadd.xlane.f32.xlu0 %v1124_v53  ;;  %v1033_v51 = vpop.f32.mrf.mxu0 }
 0x6a6   :  { %v1087_v54 = vadd.f32 %v1086_v45, %v1033_v51 }
 0x6a8   :  { %v1100_v57 = vadd.f32 %v1841_v55, %v1087_v54 }
 0x6aa   :  { %v1108_v59 = vadd.f32 %v1736_v12, %v1100_v57  ;;  %v1257_v57 = vld [vmem:[%s2693_s5 + $0x8] sm:$0xff] }
 0x6ab   :  { %v2360_v60 = vld [vmem:[%s2689_s8 + $0x8] sm:$0xff]  ;;  %1294 = vmatpush.msrb.mxu2 %v1257_v57 }
 0x6ac   :  { %1114 = vst.msk [vmem:[%s2689_s8 + $0x10] sm:$0xff] %vm101_vm1, %v1108_v59  ;;  %v1127_v62 = vsel %vm101_vm1, %v2360_v60, 0.0 }
 0x6ad   :  { %1128 = vadd.xlane.f32.xlu1 %v1127_v62  ;;  %v1036_v63 = vpop.f32.mrf.mxu0 }
 0x6ae   :  { %v1090_v1 = vadd.f32 %v1089_v58, %v1036_v63  ;;  %v1256_v58 = vld [vmem:[%s2693_s5] sm:$0xff] }
 0x6af   :  { %1295 = vmatpush.msrb.mxu2 %v1256_v58 }
 0x6b0   :  { %v1101_v4 = vadd.f32 %v1842_v3, %v1090_v1 }
 0x6b2   :  { %v1109_v5 = vadd.f32 %v1736_v12, %v1101_v4 }
 0x6b3   :  { %v2374_v6 = vld [vmem:[%s2689_s8 + $0x10] sm:$0xff] }
 0x6b4   :  { %1115 = vst.msk [vmem:[%s2689_s8 + $0x18] sm:$0xff] %vm101_vm1, %v1109_v5  ;;  %v1130_v8 = vsel %vm101_vm1, %v2374_v6, 0.0 }
 0x6b5   :  { %1131 = vadd.xlane.f32.xlu2 %v1130_v8  ;;  %v1039_v9 = vpop.f32.mrf.mxu0 }
 0x6b6   :  { %v1093_v10 = vadd.f32 %v1092_v56, %v1039_v9 }
 0x6b8   :  { %v1102_v13 = vadd.f32 %v1843_v11, %v1093_v10 }
 0x6ba   :  { %v1110_v14 = vadd.f32 %v1736_v12, %v1102_v13 }
 0x6bb   :  { %v2388_v15 = vld [vmem:[%s2689_s8 + $0x18] sm:$0xff] }
 0x6bc   :  { %1116 = vst.msk [vmem:[%s2689_s8 + $0x20] sm:$0xff] %vm101_vm1, %v1110_v14  ;;  %v1133_v17 = vsel %vm101_vm1, %v2388_v15, 0.0 }
 0x6bd   :  { %1134 = vadd.xlane.f32.xlu0 %v1133_v17  ;;  %v1042_v19 = vpop.f32.mrf.mxu0 }
 0x6be   :  { %v1096_v20 = vadd.f32 %v1095_v18, %v1042_v19 }
 0x6c0   :  { %v1103_v0 = vadd.f32 %v1844_v46, %v1096_v20 }
 0x6c2   :  { %v1111_v21 = vadd.f32 %v1736_v12, %v1103_v0 }
 0x6c3   :  { %v2402_v61 = vld [vmem:[%s2689_s8 + $0x20] sm:$0xff] }
 0x6c4   :  { %1117 = vst.msk [vmem:[%s2689_s8 + $0x28] sm:$0xff] %vm101_vm1, %v1111_v21  ;;  %v1136_v16 = vsel %vm101_vm1, %v2402_v61, 0.0 }
 0x6c5   :  { %1137 = vadd.xlane.f32.xlu1 %v1136_v16 }
 0x6cb   :  { %v2413_v22 = vld [vmem:[%s2689_s8 + $0x28] sm:$0xff] }
 0x6cc   :  { %v1139_v23 = vsel %vm101_vm1, %v2413_v22, 0.0 }
 0x6cd   :  { %1140 = vadd.xlane.f32.xlu2 %v1139_v23 }
 0x718   :  { %v1126_v27 = vpop.xlane.xlu0 %1125 }
 0x719   :  { %v1142_v24 = vmul.f32 %v1126_v27, %v2000_v48 }
 0x71b   :  { %v2419_v7 = vsub.f32 %v2346_v52, %v1142_v24 }
 0x71d   :  { %v1154_v25 = vmul.f32 %v2419_v7, %v2419_v7 }
 0x71f   :  { %v1160_v26 = vsel %vm101_vm1, %v1154_v25, 0.0 }
 0x720   :  { %v1129_v34 = vpop.xlane.xlu1 %1128  ;;  %1161 = vadd.xlane.f32.xlu0 %v1160_v26 }
 0x721   :  { %v1143_v28 = vmul.f32 %v1129_v34, %v2000_v48 }
 0x723   :  { %v2426_v29 = vsub.f32 %v2360_v60, %v1143_v28 }
 0x725   :  { %v1155_v38 = vmul.f32 %v2426_v29, %v2426_v29 }
 0x727   :  { %v1163_v30 = vsel %vm101_vm1, %v1155_v38, 0.0 }
 0x728   :  { %1164 = vadd.xlane.f32.xlu1 %v1163_v30  ;;  %v1132_v31 = vpop.xlane.xlu2 %1131 }
 0x729   :  { %v1144_v44 = vmul.f32 %v1132_v31, %v2000_v48 }
 0x72b   :  { %v2439_v33 = vsub.f32 %v2374_v6, %v1144_v44  ;;  %v1383_v44 = vld [vmem:[%s2694_s6 + $0x70] sm:$0xff] }
 0x72c   :  { %1388 = vmatpush.msrb.mxu3 %v1383_v44 }
 0x72d   :  { %v1156_v35 = vmul.f32 %v2439_v33, %v2439_v33 }
 0x72f   :  { %v1166_v36 = vsel %vm101_vm1, %v1156_v35, 0.0 }
 0x730   :  { %v1135_v37 = vpop.xlane.xlu0 %1134  ;;  %1167 = vadd.xlane.f32.xlu2 %v1166_v36 }
 0x731   :  { %v1145_v12 = vmul.f32 %v1135_v37, %v2000_v48 }
 0x733   :  { %v2446_v39 = vsub.f32 %v2388_v15, %v1145_v12 }
 0x735   :  { %v1157_v40 = vmul.f32 %v2446_v39, %v2446_v39 }
 0x737   :  { %v1169_v41 = vsel %vm101_vm1, %v1157_v40, 0.0 }
 0x738   :  { %1170 = vadd.xlane.f32.xlu0 %v1169_v41  ;;  %v1138_v42 = vpop.xlane.xlu1 %1137  ;;  %v1381_v41 = vld [vmem:[%s2694_s6 + $0x60] sm:$0xff] }
 0x739   :  { %v1146_v43 = vmul.f32 %v1138_v42, %v2000_v48 }
 0x73b   :  { %v2453_v45 = vsub.f32 %v2402_v61, %v1146_v43 }
 0x73d   :  { %v1158_v47 = vmul.f32 %v2453_v45, %v2453_v45 }
 0x73f   :  { %v1172_v49 = vsel %vm101_vm1, %v1158_v47, 0.0 }
 0x740   :  { %1173 = vadd.xlane.f32.xlu1 %v1172_v49  ;;  %v1141_v50 = vpop.xlane.xlu2 %1140  ;;  %v1380_v49 = vld [vmem:[%s2694_s6 + $0x58] sm:$0xff] }
 0x741   :  { %v1147_v53 = vmul.f32 %v1141_v50, %v2000_v48 }
 0x743   :  { %v2460_v51 = vsub.f32 %v2413_v22, %v1147_v53 }
 0x745   :  { %v1159_v54 = vmul.f32 %v2460_v51, %v2460_v51 }
 0x747   :  { %v1175_v55 = vsel %vm101_vm1, %v1159_v54, 0.0 }
 0x748   :  { %1176 = vadd.xlane.f32.xlu2 %v1175_v55  ;;  %v1379_v55 = vld [vmem:[%s2694_s6 + $0x50] sm:$0xff] }
 0x793   :  { %v1162_v59 = vpop.xlane.xlu0 %1161 }
 0x794   :  { %v1178_v62 = vmul.f32 %v1162_v59, %v2000_v48  ;;  %v1378_v59 = vld [vmem:[%s2694_s6 + $0x48] sm:$0xff] }
 0x796   :  { %v1184_v63 = vadd.f32 1e-06, %v1178_v62 }
 0x798   :  { %1803 = vrsqrt.f32 %v1184_v63  ;;  %vm1196_vm12 = vweird.f32 %v1184_v63 }
 0x79b   :  { %v1165_v1 = vpop.xlane.xlu1 %1164 }
 0x79c   :  { %v1179_v3 = vmul.f32 %v1165_v1, %v2000_v48 }
 0x79e   :  { %v1804_v4 = vpop.eup %1803  ;;  %v1185_v5 = vadd.f32 1e-06, %v1179_v3 }
 0x79f   :  { %v1191_v56 = vmul.f32 %v1804_v4, %v1184_v63  ;;  %vm1197_vm0 = vweird.f32 %v1804_v4 }
 0x7a0   :  { %1805 = vrsqrt.f32 %v1185_v5  ;;  %vm1198_vm13 = vmor %vm1196_vm12, %vm1197_vm0  ;;  %vm1206_vm15 = vweird.f32 %v1185_v5 }
 0x7a1   :  { %v1192_v8 = vmul.f32 %v1804_v4, %v1191_v56 }
 0x7a3   :  { %v1193_v9 = vmul.f32 0.5, %v1192_v8  ;;  %v1168_v10 = vpop.xlane.xlu2 %1167 }
 0x7a4   :  { %v1180_v11 = vmul.f32 %v1168_v10, %v2000_v48 }
 0x7a5   :  { %v1194_v13 = vsub.f32 1.5, %v1193_v9 }
 0x7a6   :  { %v1806_v14 = vpop.eup %1805  ;;  %v1186_v17 = vadd.f32 1e-06, %v1180_v11 }
 0x7a7   :  { %v1195_v18 = vmul.f32 %v1804_v4, %v1194_v13  ;;  %v1201_v19 = vmul.f32 %v1806_v14, %v1185_v5  ;;  %vm1207_vm14 = vweird.f32 %v1806_v14 }
 0x7a8   :  { %1807 = vrsqrt.f32 %v1186_v17  ;;  %vm1208_vm2 = vmor %vm1206_vm15, %vm1207_vm14  ;;  %vm1216_vm4 = vweird.f32 %v1186_v17 }
 0x7a9   :  { %v1199_v20 = vsel %vm1198_vm13, %v1804_v4, %v1195_v18  ;;  %v1202_v46 = vmul.f32 %v1806_v14, %v1201_v19 }
 0x7aa   :  { %v1250_v0 = vmul.f32 %v1199_v20, %v2419_v7 }
 0x7ab   :  { %v1203_v21 = vmul.f32 0.5, %v1202_v46  ;;  %v1171_v16 = vpop.xlane.xlu0 %1170  ;;  %v1377_v46 = vld [vmem:[%s2694_s6 + $0x40] sm:$0xff] }
 0x7ac   :  { %v1181_v23 = vmul.f32 %v1171_v16, %v2000_v48  ;;  %1708 = vmatmul.msk.f32.vlgmr.msrb.gmra.mxu2 %vm101_vm1, %v1250_v0  ;;  %v1375_v0 = vld [vmem:[%s2694_s6 + $0x30] sm:$0xff]  ;;  %v1372_v16 = vld [vmem:[%s2694_s6 + $0x18] sm:$0xff] }
 0x7ad   :  { %v1204_v27 = vsub.f32 1.5, %v1203_v21  ;;  %v1373_v21 = vld [vmem:[%s2694_s6 + $0x20] sm:$0xff] }
 0x7ae   :  { %v1808_v24 = vpop.eup %1807  ;;  %v1187_v25 = vadd.f32 1e-06, %v1181_v23  ;;  %v1371_v23 = vld [vmem:[%s2694_s6 + $0x10] sm:$0xff] }
 0x7af   :  { %v1211_v26 = vmul.f32 %v1808_v24, %v1186_v17  ;;  %v1205_v34 = vmul.f32 %v1806_v14, %v1204_v27  ;;  %vm1217_vm3 = vweird.f32 %v1808_v24  ;;  %v1370_v27 = vld [vmem:[%s2694_s6 + $0x8] sm:$0xff] }
 0x7b0   :  { %1809 = vrsqrt.f32 %v1187_v25  ;;  %vm1218_vm5 = vmor %vm1216_vm4, %vm1217_vm3  ;;  %vm1226_vm7 = vweird.f32 %v1187_v25 }
 0x7b1   :  { %v1212_v28 = vmul.f32 %v1808_v24, %v1211_v26  ;;  %v1209_v38 = vsel %vm1208_vm2, %v1806_v14, %v1205_v34 }
 0x7b2   :  { %v1251_v30 = vmul.f32 %v1209_v38, %v2426_v29  ;;  %v1382_v29 = vld [vmem:[%s2694_s6 + $0x68] sm:$0xff] }
 0x7b3   :  { %v1213_v7 = vmul.f32 0.5, %v1212_v28  ;;  %v1174_v31 = vpop.xlane.xlu1 %1173  ;;  %1389 = vmatpush.msrb.mxu3 %v1382_v29 }
 0x7b4   :  { %v1182_v2 = vmul.f32 %v1174_v31, %v2000_v48  ;;  %1709 = vmatmul.msk.f32.gmra.mxu2 %vm101_vm1, %v1251_v30 }
 0x7b5   :  { %v1214_v35 = vsub.f32 1.5, %v1213_v7  ;;  %1390 = vmatpush.msrb.mxu3 %v1381_v41 }
 0x7b6   :  { %v1810_v36 = vpop.eup %1809  ;;  %v1188_v37 = vadd.f32 1e-06, %v1182_v2 }
 0x7b7   :  { %v1221_v12 = vmul.f32 %v1810_v36, %v1187_v25  ;;  %v1215_v40 = vmul.f32 %v1808_v24, %v1214_v35  ;;  %vm1227_vm6 = vweird.f32 %v1810_v36  ;;  %1391 = vmatpush.msrb.mxu3 %v1380_v49  ;;  %v1737_v25 = vld [vmem:[%s2691_s7 + $0x7] ss:$0 sm:$0xff] }
 0x7b8   :  { %1811 = vrsqrt.f32 %v1188_v37  ;;  %vm1228_vm8 = vmor %vm1226_vm7, %vm1227_vm6  ;;  %vm1236_vm10 = vweird.f32 %v1188_v37 }
 0x7b9   :  { %v1222_v42 = vmul.f32 %v1810_v36, %v1221_v12  ;;  %v1219_v43 = vsel %vm1218_vm5, %v1808_v24, %v1215_v40  ;;  %1392 = vmatpush.msrb.mxu3 %v1379_v55  ;;  %v1369_v24 = vld [vmem:[%s2694_s6] sm:$0xff] }
 0x7ba   :  { %v1252_v47 = vmul.f32 %v1219_v43, %v2439_v33 }
 0x7bb   :  { %v1223_v50 = vmul.f32 0.5, %v1222_v42  ;;  %v1177_v53 = vpop.xlane.xlu2 %1176  ;;  %1393 = vmatpush.msrb.mxu3 %v1378_v59 }
 0x7bc   :  { %v1183_v54 = vmul.f32 %v1177_v53, %v2000_v48  ;;  %1710 = vmatmul.msk.f32.gmra.mxu2 %vm101_vm1, %v1252_v47 }
 0x7bd   :  { %v1224_v57 = vsub.f32 1.5, %v1223_v50  ;;  %1394 = vmatpush.msrb.mxu3 %v1377_v46 }
 0x7be   :  { %v1812_v58 = vpop.eup %1811  ;;  %v1189_v33 = vadd.f32 1e-06, %v1183_v54 }
 0x7bf   :  { %v1231_v62 = vmul.f32 %v1812_v58, %v1188_v37  ;;  %v1225_v63 = vmul.f32 %v1810_v36, %v1224_v57  ;;  %vm1237_vm9 = vweird.f32 %v1812_v58 }
 0x7c0   :  { %1813 = vrsqrt.f32 %v1189_v33  ;;  %vm1238_vm11 = vmor %vm1236_vm10, %vm1237_vm9  ;;  %vm1246_vm12 = vweird.f32 %v1189_v33 }
 0x7c1   :  { %v1232_v1 = vmul.f32 %v1812_v58, %v1231_v62  ;;  %v1229_v3 = vsel %vm1228_vm8, %v1810_v36, %v1225_v63 }
 0x7c2   :  { %v1253_v4 = vmul.f32 %v1229_v3, %v2446_v39 }
 0x7c3   :  { %v1233_v5 = vmul.f32 0.5, %v1232_v1 }
 0x7c4   :  { %1711 = vmatmul.msk.f32.gmra.mxu2 %vm101_vm1, %v1253_v4 }
 0x7c5   :  { %v1234_v56 = vsub.f32 1.5, %v1233_v5 }
 0x7c6   :  { %v1814_v8 = vpop.eup %1813 }
 0x7c7   :  { %v1241_v9 = vmul.f32 %v1814_v8, %v1189_v33  ;;  %v1235_v10 = vmul.f32 %v1812_v58, %v1234_v56  ;;  %vm1247_vm0 = vweird.f32 %v1814_v8 }
 0x7c8   :  { %vm1248_vm13 = vmor %vm1246_vm12, %vm1247_vm0 }
 0x7c9   :  { %v1242_v11 = vmul.f32 %v1814_v8, %v1241_v9  ;;  %v1239_v13 = vsel %vm1238_vm11, %v1812_v58, %v1235_v10 }
 0x7ca   :  { %v1254_v14 = vmul.f32 %v1239_v13, %v2453_v45  ;;  %v1376_v45 = vld [vmem:[%s2694_s6 + $0x38] sm:$0xff] }
 0x7cb   :  { %v1243_v17 = vmul.f32 0.5, %v1242_v11  ;;  %1395 = vmatpush.msrb.mxu3 %v1376_v45 }
 0x7cc   :  { %1712 = vmatmul.msk.f32.gmra.mxu2 %vm101_vm1, %v1254_v14 }
 0x7cd   :  { %v1244_v18 = vsub.f32 1.5, %v1243_v17  ;;  %1396 = vmatpush.msrb.mxu3 %v1375_v0 }
 0x7cf   :  { %v1245_v39 = vmul.f32 %v1814_v8, %v1244_v18 }
 0x7d1   :  { %v1249_v19 = vsel %vm1248_vm13, %v1814_v8, %v1245_v39 }
 0x7d2   :  { %v1255_v20 = vmul.f32 %v1249_v19, %v2460_v51  ;;  %v1374_v51 = vld [vmem:[%s2694_s6 + $0x28] sm:$0xff] }
 0x7d3   :  { %1397 = vmatpush.msrb.mxu3 %v1374_v51 }
 0x7d4   :  { %1713 = vmatmul.msk.f32.gmra.mxu2 %vm101_vm1, %v1255_v20 }
 0x7d5   :  { %1398 = vmatpush.msrb.mxu3 %v1373_v21 }
 0x7d7   :  { %1399 = vmatpush.msrb.mxu3 %v1372_v16 }
 0x7d9   :  { %1400 = vmatpush.msrb.mxu3 %v1371_v23 }
 0x7db   :  { %1401 = vmatpush.msrb.mxu3 %v1370_v27 }
 0x7dd   :  { %1402 = vmatpush.msrb.mxu3 %v1369_v24 }
 0x82f   :  { %v1297_v26 = vpop.f32.mrf.mxu2 }
 0x830   :  { %v1298_v34 = vadd.f32 %v1737_v25, %v1297_v26 }
 0x832   :  { %v1315_v28 = vmul.f32 %v1298_v34, %v1298_v34 }
 0x834   :  { %v1321_v38 = vmul.f32 %v1315_v28, %v1298_v34 }
 0x836   :  { %v1327_v30 = vmul.f32 0.044715, %v1321_v38 }
 0x837   :  { %v1300_v7 = vpop.f32.mrf.mxu2 }
 0x838   :  { %v1333_v31 = vadd.f32 %v1327_v30, %v1298_v34  ;;  %v1301_v2 = vadd.f32 %v1737_v25, %v1300_v7 }
 0x83a   :  { %v1339_v32 = vmul.f32 0.7978846, %v1333_v31  ;;  %v1316_v44 = vmul.f32 %v1301_v2, %v1301_v2 }
 0x83c   :  { %1815 = vtanh.f32 %v1339_v32  ;;  %v1322_v35 = vmul.f32 %v1316_v44, %v1301_v2  ;;  %v1738_v44 = vld [vmem:[%s2691_s7 + $0x8] ss:$0 sm:$0xff] }
 0x83e   :  { %v1328_v36 = vmul.f32 0.044715, %v1322_v35 }
 0x83f   :  { %v1303_v37 = vpop.f32.mrf.mxu2 }
 0x840   :  { %v1304_v29 = vadd.f32 %v1737_v25, %v1303_v37  ;;  %v1334_v12 = vadd.f32 %v1328_v36, %v1301_v2 }
 0x842   :  { %v1816_v40 = vpop.eup %1815  ;;  %v1317_v41 = vmul.f32 %v1304_v29, %v1304_v29  ;;  %v1340_v42 = vmul.f32 0.7978846, %v1334_v12 }
 0x843   :  { %v1351_v43 = vadd.f32 1.0, %v1816_v40 }
 0x844   :  { %v1323_v47 = vmul.f32 %v1317_v41, %v1304_v29  ;;  %1817 = vtanh.f32 %v1340_v42 }
 0x845   :  { %v1357_v49 = vmul.f32 0.5, %v1351_v43 }
 0x846   :  { %v1329_v50 = vmul.f32 0.044715, %v1323_v47 }
 0x847   :  { %v1306_v53 = vpop.f32.mrf.mxu2  ;;  %v1363_v54 = vmul.f32 %v1357_v49, %v1298_v34 }
 0x848   :  { %v1307_v55 = vadd.f32 %v1737_v25, %v1306_v53  ;;  %v1335_v57 = vadd.f32 %v1329_v50, %v1304_v29 }
 0x849   :  { %1403 = vmatmul.f32.vlgmr.msrb.gmra.mxu3 %v1363_v54 }
 0x84a   :  { %v1818_v58 = vpop.eup %1817  ;;  %v1318_v33 = vmul.f32 %v1307_v55, %v1307_v55  ;;  %v1341_v59 = vmul.f32 0.7978846, %v1335_v57 }
 0x84b   :  { %v1352_v62 = vadd.f32 1.0, %v1818_v58 }
 0x84c   :  { %v1324_v63 = vmul.f32 %v1318_v33, %v1307_v55  ;;  %1819 = vtanh.f32 %v1341_v59 }
 0x84d   :  { %v1358_v1 = vmul.f32 0.5, %v1352_v62 }
 0x84e   :  { %v1330_v3 = vmul.f32 0.044715, %v1324_v63 }
 0x84f   :  { %v1309_v4 = vpop.f32.mrf.mxu2  ;;  %v1364_v5 = vmul.f32 %v1358_v1, %v1301_v2 }
 0x850   :  { %v1310_v56 = vadd.f32 %v1737_v25, %v1309_v4  ;;  %v1336_v8 = vadd.f32 %v1330_v3, %v1307_v55 }
 0x851   :  { %1406 = vmatmul.f32.gmra.mxu3 %v1364_v5 }
 0x852   :  { %v1820_v9 = vpop.eup %1819  ;;  %v1319_v10 = vmul.f32 %v1310_v56, %v1310_v56  ;;  %v1342_v11 = vmul.f32 0.7978846, %v1336_v8 }
 0x853   :  { %v1353_v13 = vadd.f32 1.0, %v1820_v9 }
 0x854   :  { %v1325_v14 = vmul.f32 %v1319_v10, %v1310_v56  ;;  %1821 = vtanh.f32 %v1342_v11 }
 0x855   :  { %v1359_v17 = vmul.f32 0.5, %v1353_v13 }
 0x856   :  { %v1331_v18 = vmul.f32 0.044715, %v1325_v14 }
 0x857   :  { %v1312_v39 = vpop.f32.mrf.mxu2  ;;  %v1365_v19 = vmul.f32 %v1359_v17, %v1304_v29 }
 0x858   :  { %v1313_v20 = vadd.f32 %v1737_v25, %v1312_v39  ;;  %v1337_v46 = vadd.f32 %v1331_v18, %v1310_v56 }
 0x859   :  { %1409 = vmatmul.f32.gmra.mxu3 %v1365_v19 }
 0x85a   :  { %v1822_v45 = vpop.eup %1821  ;;  %v1320_v0 = vmul.f32 %v1313_v20, %v1313_v20  ;;  %v1343_v51 = vmul.f32 0.7978846, %v1337_v46 }
 0x85b   :  { %v1354_v21 = vadd.f32 1.0, %v1822_v45 }
 0x85c   :  { %v1326_v16 = vmul.f32 %v1320_v0, %v1313_v20  ;;  %1823 = vtanh.f32 %v1343_v51 }
 0x85d   :  { %v1360_v23 = vmul.f32 0.5, %v1354_v21 }
 0x85e   :  { %v1332_v27 = vmul.f32 0.044715, %v1326_v16 }
 0x85f   :  { %v1366_v24 = vmul.f32 %v1360_v23, %v1307_v55 }
 0x860   :  { %v1338_v26 = vadd.f32 %v1332_v27, %v1313_v20 }
 0x861   :  { %1412 = vmatmul.f32.gmra.mxu3 %v1366_v24 }
 0x862   :  { %v1824_v34 = vpop.eup %1823  ;;  %v1344_v28 = vmul.f32 0.7978846, %v1338_v26 }
 0x863   :  { %v1355_v38 = vadd.f32 1.0, %v1824_v34 }
 0x864   :  { %1825 = vtanh.f32 %v1344_v28 }
 0x865   :  { %v1361_v30 = vmul.f32 0.5, %v1355_v38 }
 0x867   :  { %v1367_v7 = vmul.f32 %v1361_v30, %v1310_v56 }
 0x869   :  { %1415 = vmatmul.f32.gmra.mxu3 %v1367_v7 }
 0x86a   :  { %v1826_v25 = vpop.eup %1825 }
 0x86b   :  { %v1356_v31 = vadd.f32 1.0, %v1826_v25 }
 0x86d   :  { %v1362_v2 = vmul.f32 0.5, %v1356_v31 }
 0x86f   :  { %v1368_v32 = vmul.f32 %v1362_v2, %v1313_v20 }
 0x871   :  { %1418 = vmatmul.f32.gmra.mxu3 %v1368_v32 }
 0x8cc   :  { %v1404_v35 = vpop.f32.mrf.mxu3 }
 0x8cd   :  { %v1405_v36 = vadd.f32 %v1738_v44, %v1404_v35 }
 0x8cf   :  { %v1422_v37 = vadd.f32 %v1405_v36, %v2346_v52 }
 0x8d1   :  { %1428 = vst.msk [vmem:[%s2689_s8] sm:$0xff] %vm101_vm1, %v1422_v37 }
 0x8d4   :  { %v1407_v29 = vpop.f32.mrf.mxu3 }
 0x8d5   :  { %v1408_v12 = vadd.f32 %v1738_v44, %v1407_v29 }
 0x8d7   :  { %v1423_v40 = vadd.f32 %v1408_v12, %v2360_v60 }
 0x8d8   :  { %v1434_v41 = vld [vmem:[%s2689_s8] sm:$0xff] }
 0x8d9   :  { %1429 = vst.msk [vmem:[%s2689_s8 + $0x8] sm:$0xff] %vm101_vm1, %v1423_v40  ;;  %v1440_v52 = vsel %vm101_vm1, %v1434_v41, 0.0 }
 0x8da   :  { %1441 = vadd.xlane.f32.xlu0 %v1440_v52 }
 0x8dc   :  { %v1410_v42 = vpop.f32.mrf.mxu3 }
 0x8dd   :  { %v1411_v43 = vadd.f32 %v1738_v44, %v1410_v42 }
 0x8df   :  { %v1424_v47 = vadd.f32 %v1411_v43, %v2374_v6 }
 0x8e0   :  { %v1435_v60 = vld [vmem:[%s2689_s8 + $0x8] sm:$0xff] }
 0x8e1   :  { %1430 = vst.msk [vmem:[%s2689_s8 + $0x10] sm:$0xff] %vm101_vm1, %v1424_v47  ;;  %v1443_v49 = vsel %vm101_vm1, %v1435_v60, 0.0 }
 0x8e2   :  { %1444 = vadd.xlane.f32.xlu1 %v1443_v49 }
 0x8e4   :  { %v1413_v50 = vpop.f32.mrf.mxu3 }
 0x8e5   :  { %v1414_v53 = vadd.f32 %v1738_v44, %v1413_v50 }
 0x8e7   :  { %v1425_v54 = vadd.f32 %v1414_v53, %v2388_v15  ;;  %v2635_v53 = vld [vmem:[%s2691_s7 + $0x9] ss:$0 sm:$0xff] }
 0x8e8   :  { %v1436_v6 = vld [vmem:[%s2689_s8 + $0x10] sm:$0xff] }
 0x8e9   :  { %1431 = vst.msk [vmem:[%s2689_s8 + $0x18] sm:$0xff] %vm101_vm1, %v1425_v54  ;;  %v1446_v55 = vsel %vm101_vm1, %v1436_v6, 0.0 }
 0x8ea   :  { %1447 = vadd.xlane.f32.xlu2 %v1446_v55  ;;  %v2640_v55 = vld [vmem:[%s2691_s7 + $0xa] ss:$0 sm:$0xff] }
 0x8ec   :  { %v1416_v57 = vpop.f32.mrf.mxu3 }
 0x8ed   :  { %v1417_v58 = vadd.f32 %v1738_v44, %v1416_v57 }
 0x8ef   :  { %v1426_v33 = vadd.f32 %v1417_v58, %v2402_v61 }
 0x8f0   :  { %v1437_v15 = vld [vmem:[%s2689_s8 + $0x18] sm:$0xff] }
 0x8f1   :  { %1432 = vst.msk [vmem:[%s2689_s8 + $0x20] sm:$0xff] %vm101_vm1, %v1426_v33  ;;  %v1449_v59 = vsel %vm101_vm1, %v1437_v15, 0.0 }
 0x8f2   :  { %1450 = vadd.xlane.f32.xlu0 %v1449_v59 }
 0x8f4   :  { %v1419_v62 = vpop.f32.mrf.mxu3 }
 0x8f5   :  { %v1420_v63 = vadd.f32 %v1738_v44, %v1419_v62 }
 0x8f7   :  { %v1427_v1 = vadd.f32 %v1420_v63, %v2413_v22 }
 0x8f8   :  { %v1438_v61 = vld [vmem:[%s2689_s8 + $0x20] sm:$0xff] }
 0x8f9   :  { %1433 = vst.msk [vmem:[%s2689_s8 + $0x28] sm:$0xff] %vm101_vm1, %v1427_v1  ;;  %v1452_v3 = vsel %vm101_vm1, %v1438_v61, 0.0 }
 0x8fa   :  { %1453 = vadd.xlane.f32.xlu1 %v1452_v3 }
 0x900   :  { %v1439_v4 = vld [vmem:[%s2689_s8 + $0x28] sm:$0xff] }
 0x901   :  { %v1455_v5 = vsel %vm101_vm1, %v1439_v4, 0.0 }
 0x902   :  { %1456 = vadd.xlane.f32.xlu2 %v1455_v5 }
 0x94d   :  { %v1442_v22 = vpop.xlane.xlu0 %1441 }
 0x94e   :  { %v1458_v56 = vmul.f32 %v1442_v22, %v2000_v48 }
 0x950   :  { %v1464_v8 = vsub.f32 %v1434_v41, %v1458_v56 }
 0x952   :  { %v1470_v9 = vmul.f32 %v1464_v8, %v1464_v8 }
 0x954   :  { %v1476_v10 = vsel %vm101_vm1, %v1470_v9, 0.0 }
 0x955   :  { %v1445_v11 = vpop.xlane.xlu1 %1444  ;;  %1477 = vadd.xlane.f32.xlu0 %v1476_v10 }
 0x956   :  { %v1459_v13 = vmul.f32 %v1445_v11, %v2000_v48 }
 0x958   :  { %v2600_v14 = vsub.f32 %v1435_v60, %v1459_v13 }
 0x95a   :  { %v1471_v17 = vmul.f32 %v2600_v14, %v2600_v14 }
 0x95c   :  { %v1479_v18 = vsel %vm101_vm1, %v1471_v17, 0.0 }
 0x95d   :  { %1480 = vadd.xlane.f32.xlu1 %v1479_v18  ;;  %v1448_v39 = vpop.xlane.xlu2 %1447 }
 0x95e   :  { %v1460_v19 = vmul.f32 %v1448_v39, %v2000_v48 }
 0x960   :  { %v2606_v20 = vsub.f32 %v1436_v6, %v1460_v19 }
 0x962   :  { %v1472_v46 = vmul.f32 %v2606_v20, %v2606_v20 }
 0x964   :  { %v1482_v45 = vsel %vm101_vm1, %v1472_v46, 0.0 }
 0x965   :  { %v1451_v0 = vpop.xlane.xlu0 %1450  ;;  %1483 = vadd.xlane.f32.xlu2 %v1482_v45 }
 0x966   :  { %v1461_v51 = vmul.f32 %v1451_v0, %v2000_v48 }
 0x968   :  { %v2612_v21 = vsub.f32 %v1437_v15, %v1461_v51 }
 0x96a   :  { %v1473_v16 = vmul.f32 %v2612_v21, %v2612_v21 }
 0x96c   :  { %v1485_v23 = vsel %vm101_vm1, %v1473_v16, 0.0 }
 0x96d   :  { %v1454_v27 = vpop.xlane.xlu1 %1453  ;;  %1486 = vadd.xlane.f32.xlu0 %v1485_v23 }
 0x96e   :  { %v1462_v24 = vmul.f32 %v1454_v27, %v2000_v48 }
 0x970   :  { %v2618_v26 = vsub.f32 %v1438_v61, %v1462_v24 }
 0x972   :  { %v1474_v34 = vmul.f32 %v2618_v26, %v2618_v26 }
 0x974   :  { %v1488_v28 = vsel %vm101_vm1, %v1474_v34, 0.0 }
 0x975   :  { %1489 = vadd.xlane.f32.xlu1 %v1488_v28  ;;  %v1457_v38 = vpop.xlane.xlu2 %1456 }
 0x976   :  { %v1463_v30 = vmul.f32 %v1457_v38, %v2000_v48 }
 0x978   :  { %v2624_v7 = vsub.f32 %v1439_v4, %v1463_v30 }
 0x97a   :  { %v1475_v25 = vmul.f32 %v2624_v7, %v2624_v7 }
 0x97c   :  { %v1491_v31 = vsel %vm101_vm1, %v1475_v25, 0.0 }
 0x97d   :  { %1492 = vadd.xlane.f32.xlu2 %v1491_v31 }
 0x9c8   :  { %v1478_v2 = vpop.xlane.xlu0 %1477 }
 0x9c9   :  { %v1494_v32 = vmul.f32 %v1478_v2, %v2000_v48 }
 0x9cb   :  { %v1500_v44 = vadd.f32 1e-06, %v1494_v32 }
 0x9cd   :  { %1827 = vrsqrt.f32 %v1500_v44  ;;  %vm1512_vm15 = vweird.f32 %v1500_v44 }
 0x9d0   :  { %v1481_v35 = vpop.xlane.xlu1 %1480 }
 0x9d1   :  { %v1495_v36 = vmul.f32 %v1481_v35, %v2000_v48 }
 0x9d3   :  { %v1828_v37 = vpop.eup %1827  ;;  %v1501_v29 = vadd.f32 1e-06, %v1495_v36 }
 0x9d4   :  { %v1507_v12 = vmul.f32 %v1828_v37, %v1500_v44  ;;  %vm1513_vm14 = vweird.f32 %v1828_v37 }
 0x9d5   :  { %1829 = vrsqrt.f32 %v1501_v29  ;;  %vm1514_vm2 = vmor %vm1512_vm15, %vm1513_vm14  ;;  %vm1522_vm4 = vweird.f32 %v1501_v29 }
 0x9d6   :  { %v1508_v40 = vmul.f32 %v1828_v37, %v1507_v12 }
 0x9d8   :  { %v1509_v41 = vmul.f32 0.5, %v1508_v40  ;;  %v1484_v52 = vpop.xlane.xlu2 %1483 }
 0x9d9   :  { %v1496_v42 = vmul.f32 %v1484_v52, %v2000_v48 }
 0x9da   :  { %v1510_v43 = vsub.f32 1.5, %v1509_v41 }
 0x9db   :  { %v1830_v47 = vpop.eup %1829  ;;  %v1502_v60 = vadd.f32 1e-06, %v1496_v42 }
 0x9dc   :  { %v1511_v49 = vmul.f32 %v1828_v37, %v1510_v43  ;;  %v1517_v50 = vmul.f32 %v1830_v47, %v1501_v29  ;;  %vm1523_vm3 = vweird.f32 %v1830_v47 }
 0x9dd   :  { %1831 = vrsqrt.f32 %v1502_v60  ;;  %vm1524_vm5 = vmor %vm1522_vm4, %vm1523_vm3  ;;  %vm1532_vm7 = vweird.f32 %v1502_v60 }
 0x9de   :  { %v1515_v54 = vsel %vm1514_vm2, %v1828_v37, %v1511_v49  ;;  %v1518_v6 = vmul.f32 %v1830_v47, %v1517_v50 }
 0x9df   :  { %v1566_v57 = vmul.f32 %v1515_v54, %v1464_v8 }
 0x9e0   :  { %v1519_v58 = vmul.f32 0.5, %v1518_v6  ;;  %v1487_v33 = vpop.xlane.xlu0 %1486 }
 0x9e1   :  { %v1574_v15 = vmul.f32 %v2635_v53, %v1566_v57  ;;  %v1497_v59 = vmul.f32 %v1487_v33, %v2000_v48 }
 0x9e2   :  { %v1520_v62 = vsub.f32 1.5, %v1519_v58 }
 0x9e3   :  { %v1832_v63 = vpop.eup %1831  ;;  %v1582_v1 = vadd.f32 %v2640_v55, %v1574_v15  ;;  %v1503_v61 = vadd.f32 1e-06, %v1497_v59 }
 0x9e4   :  { %v1521_v3 = vmul.f32 %v1830_v47, %v1520_v62  ;;  %v1527_v4 = vmul.f32 %v1832_v63, %v1502_v60  ;;  %vm1533_vm6 = vweird.f32 %v1832_v63 }
 0x9e5   :  { %1588 = vst.msk [vmem:[%s2689_s8] sm:$0xff] %vm101_vm1, %v1582_v1  ;;  %1833 = vrsqrt.f32 %v1503_v61  ;;  %vm1534_vm8 = vmor %vm1532_vm7, %vm1533_vm6  ;;  %vm1542_vm10 = vweird.f32 %v1503_v61 }
 0x9e6   :  { %v1525_v5 = vsel %vm1524_vm5, %v1830_v47, %v1521_v3  ;;  %v1528_v22 = vmul.f32 %v1832_v63, %v1527_v4 }
 0x9e7   :  { %v1567_v56 = vmul.f32 %v1525_v5, %v2600_v14 }
 0x9e8   :  { %v1529_v8 = vmul.f32 0.5, %v1528_v22  ;;  %v1490_v9 = vpop.xlane.xlu1 %1489 }
 0x9e9   :  { %v1575_v10 = vmul.f32 %v2635_v53, %v1567_v56  ;;  %v1498_v11 = vmul.f32 %v1490_v9, %v2000_v48 }
 0x9ea   :  { %v1530_v13 = vsub.f32 1.5, %v1529_v8 }
 0x9eb   :  { %v1834_v17 = vpop.eup %1833  ;;  %v1583_v18 = vadd.f32 %v2640_v55, %v1575_v10  ;;  %v1504_v39 = vadd.f32 1e-06, %v1498_v11 }
 0x9ec   :  { %v1531_v19 = vmul.f32 %v1832_v63, %v1530_v13  ;;  %v1537_v46 = vmul.f32 %v1834_v17, %v1503_v61  ;;  %vm1543_vm9 = vweird.f32 %v1834_v17 }
 0x9ed   :  { %1589 = vst.msk [vmem:[%s2689_s8 + $0x8] sm:$0xff] %vm101_vm1, %v1583_v18  ;;  %1835 = vrsqrt.f32 %v1504_v39  ;;  %vm1544_vm11 = vmor %vm1542_vm10, %vm1543_vm9  ;;  %vm1552_vm12 = vweird.f32 %v1504_v39 }
 0x9ee   :  { %v1535_v14 = vsel %vm1534_vm8, %v1832_v63, %v1531_v19  ;;  %v1538_v45 = vmul.f32 %v1834_v17, %v1537_v46 }
 0x9ef   :  { %v1568_v0 = vmul.f32 %v1535_v14, %v2606_v20 }
 0x9f0   :  { %v1539_v51 = vmul.f32 0.5, %v1538_v45  ;;  %v1493_v16 = vpop.xlane.xlu2 %1492 }
 0x9f1   :  { %v1576_v23 = vmul.f32 %v2635_v53, %v1568_v0  ;;  %v1499_v27 = vmul.f32 %v1493_v16, %v2000_v48 }
 0x9f2   :  { %v1540_v24 = vsub.f32 1.5, %v1539_v51 }
 0x9f3   :  { %v1836_v34 = vpop.eup %1835  ;;  %v1584_v28 = vadd.f32 %v2640_v55, %v1576_v23  ;;  %v1505_v38 = vadd.f32 1e-06, %v1499_v27 }
 0x9f4   :  { %v1541_v30 = vmul.f32 %v1834_v17, %v1540_v24  ;;  %v1547_v25 = vmul.f32 %v1836_v34, %v1504_v39  ;;  %vm1553_vm0 = vweird.f32 %v1836_v34 }
 0x9f5   :  { %1590 = vst.msk [vmem:[%s2689_s8 + $0x10] sm:$0xff] %vm101_vm1, %v1584_v28  ;;  %1837 = vrsqrt.f32 %v1505_v38  ;;  %vm1554_vm13 = vmor %vm1552_vm12, %vm1553_vm0  ;;  %vm1562_vm15 = vweird.f32 %v1505_v38 }
 0x9f6   :  { %v1545_v20 = vsel %vm1544_vm11, %v1834_v17, %v1541_v30  ;;  %v1548_v31 = vmul.f32 %v1836_v34, %v1547_v25 }
 0x9f7   :  { %v1569_v48 = vmul.f32 %v1545_v20, %v2612_v21 }
 0x9f8   :  { %v1549_v2 = vmul.f32 0.5, %v1548_v31 }
 0x9f9   :  { %v1577_v32 = vmul.f32 %v2635_v53, %v1569_v48 }
 0x9fa   :  { %v1550_v44 = vsub.f32 1.5, %v1549_v2 }
 0x9fb   :  { %v1838_v35 = vpop.eup %1837  ;;  %v1585_v36 = vadd.f32 %v2640_v55, %v1577_v32 }
 0x9fc   :  { %v1551_v37 = vmul.f32 %v1836_v34, %v1550_v44  ;;  %v1557_v29 = vmul.f32 %v1838_v35, %v1505_v38  ;;  %vm1563_vm14 = vweird.f32 %v1838_v35 }
 0x9fd   :  { %1591 = vst.msk [vmem:[%s2689_s8 + $0x18] sm:$0xff] %vm101_vm1, %v1585_v36  ;;  %vm1564_vm2 = vmor %vm1562_vm15, %vm1563_vm14 }
 0x9fe   :  { %v1555_v12 = vsel %vm1554_vm13, %v1836_v34, %v1551_v37  ;;  %v1558_v40 = vmul.f32 %v1838_v35, %v1557_v29 }
 0x9ff   :  { %v1570_v21 = vmul.f32 %v1555_v12, %v2618_v26 }
 0xa00   :  { %v1559_v41 = vmul.f32 0.5, %v1558_v40 }
 0xa01   :  { %v1578_v52 = vmul.f32 %v2635_v53, %v1570_v21 }
 0xa02   :  { %v1560_v42 = vsub.f32 1.5, %v1559_v41 }
 0xa03   :  { %v1586_v43 = vadd.f32 %v2640_v55, %v1578_v52 }
 0xa04   :  { %v1561_v47 = vmul.f32 %v1838_v35, %v1560_v42 }
 0xa05   :  { %1592 = vst.msk [vmem:[%s2689_s8 + $0x20] sm:$0xff] %vm101_vm1, %v1586_v43 }
 0xa06   :  { %v1565_v60 = vsel %vm1564_vm2, %v1838_v35, %v1561_v47 }
 0xa07   :  { %v1571_v49 = vmul.f32 %v1565_v60, %v2624_v7 }
 0xa09   :  { %v1579_v26 = vmul.f32 %v2635_v53, %v1571_v49 }
 0xa0b   :  { %v1587_v50 = vadd.f32 %v2640_v55, %v1579_v26 }
 0xa0d   :  { %1593 = vst.msk [vmem:[%s2689_s8 + $0x28] sm:$0xff] %vm101_vm1, %v1587_v50 }

</bundles_post_ra>
